<compile_context>
chip_gen: v5e
topology: v5e:2x2
jax: 0.10.0
libtpu: 0.0.40
codegen_flags: <defaults>
</compile_context>

<pallas_src>
import functools
import math

import jax
import jax.numpy as jnp
from jax import lax
from jax.experimental import pallas as pl
from jax.experimental.pallas import tpu as pltpu

# ----- model config (small, DeiT-like) ---------------------------------------
HIDDEN = 32          # config.hidden_size
POS_DIM = 32         # self.pos_enc_dim / projection_dim
NUM_HEADS = 2        # config.num_attention_heads
HEAD_DIM = HIDDEN // NUM_HEADS
INTERMEDIATE = 64    # config.intermediate_size
NUM_LAYERS = 3       # config.num_hidden_layers
LN_EPS = 1e-12       # DeiT config.layer_norm_eps (layernorm_before/after)
PROJ_LN_EPS = 1e-5   # nn.LayerNorm default eps inside PositionProjection
LANE = 128

# packed small-parameter table: one 128-lane row per vector, padded to 24 rows
(R_PLN_G_H, R_PLN_G_E, R_PLN_B_H, R_PLN_B_E, R_PB,
 R_LN1_G, R_LN1_B,
 R_BQ0, R_BQ1, R_BK0, R_BK1, R_BV0, R_BV1,
 R_BO, R_LN2_G, R_LN2_B, R_BI, R_BO2) = range(18)
VEC_ROWS = 24

_SQRT_2_OVER_PI = math.sqrt(2.0 / math.pi)


def _layernorm(x, g, b, eps):
    mu = jnp.mean(x, axis=-1, keepdims=True)
    d = x - mu
    var = jnp.mean(d * d, axis=-1, keepdims=True)
    return d * lax.rsqrt(var + eps) * g + b


def _gelu_tanh(x):
    # tanh-approx GELU: tanh runs on the EUP (separate VLIW slot); erf would be
    # a long VALU polynomial on the critical slot.
    return 0.5 * x * (1.0 + jnp.tanh(_SQRT_2_OVER_PI * (x + 0.044715 * x * x * x)))


def _gelu_exact(x):
    # exact (erf-based) GELU, used only in the pure-JAX reference
    return 0.5 * x * (1.0 + lax.erf(x * (1.0 / math.sqrt(2.0))))


# ----------------------------- Pallas kernel ---------------------------------
def _encoder_kernel(perm_ref,                 # SMEM scalar prefetch (consumed by index_maps)
                    x_ref, emb_ref, vt_ref, pw_ref, wqkv_ref, wo_ref, wi_ref, wo2_ref,
                    out_ref, h_ref):
    l = pl.program_id(1)

    @pl.when(l == 0)
    def _():
        h_ref[...] = x_ref[0].astype(jnp.float32)

    h = h_ref[...]                            # (N, H) activation, VMEM-resident across layers
    vt = vt_ref[0]                            # (VEC_ROWS, 128) packed LN/bias table
    demb = emb_ref[0]                         # (1, POS_DIM): depth embedding of slot l

    def vrow(r, width=LANE):
        return vt[r:r + 1, :width]

    # --- PositionProjection: LN(concat(h, demb)) @ pw, computed WITHOUT a lane
    #     concat: concat-LN stats from per-part sums, matmul split over pw halves.
    cat_dim = HIDDEN + POS_DIM
    sum_e = jnp.sum(demb, axis=-1, keepdims=True)                       # (1, 1)
    mu = (jnp.sum(h, axis=-1, keepdims=True) + sum_e) / cat_dim          # (N, 1)
    dh = h - mu
    de = demb - mu                                                        # (N, POS_DIM)
    var = (jnp.sum(dh * dh, axis=-1, keepdims=True)
           + jnp.sum(de * de, axis=-1, keepdims=True)) / cat_dim
    inv = lax.rsqrt(var + PROJ_LN_EPS)
    xn_h = dh * inv * vrow(R_PLN_G_H, HIDDEN) + vrow(R_PLN_B_H, HIDDEN)
    xn_e = de * inv * vrow(R_PLN_G_E, POS_DIM) + vrow(R_PLN_B_E, POS_DIM)
    proj = (jnp.dot(xn_h, pw_ref[0, 0], preferred_element_type=jnp.float32)
            + jnp.dot(xn_e, pw_ref[0, 1], preferred_element_type=jnp.float32)
            + vrow(R_PB, HIDDEN))
    h = _gelu_tanh(proj) + h                   # Dropout(p=0) is identity

    # --- pre-LN multi-head self-attention.  Per-head Q/K/V weight slabs are
    #     zero-padded to 128 lanes so every activation is a full lane-dense vreg;
    #     the zero pad contributes exactly 0 to all contractions.
    ln1 = _layernorm(h, vrow(R_LN1_G, HIDDEN), vrow(R_LN1_B, HIDDEN), LN_EPS)
    attn_out = None
    for hh in range(NUM_HEADS):
        q = jnp.dot(ln1, wqkv_ref[0, 0 * NUM_HEADS + hh],
                    preferred_element_type=jnp.float32) + vrow(R_BQ0 + hh)   # (N, 128)
        k = jnp.dot(ln1, wqkv_ref[0, 1 * NUM_HEADS + hh],
                    preferred_element_type=jnp.float32) + vrow(R_BK0 + hh)
        v = jnp.dot(ln1, wqkv_ref[0, 2 * NUM_HEADS + hh],
                    preferred_element_type=jnp.float32) + vrow(R_BV0 + hh)
        s = jnp.einsum('nd,md->nm', q, k, preferred_element_type=jnp.float32)  # (N, N)
        m = jnp.max(s, axis=-1, keepdims=True)
        e = jnp.exp(s - m)
        p = e * pl.reciprocal(jnp.sum(e, axis=-1, keepdims=True), approx=True)
        ctx = jnp.dot(p, v, preferred_element_type=jnp.float32)                # (N, 128)
        # output projection distributed over heads (no ctx concat)
        contrib = jnp.dot(ctx, wo_ref[0, hh], preferred_element_type=jnp.float32)
        attn_out = contrib if attn_out is None else attn_out + contrib
    h = attn_out + vrow(R_BO, HIDDEN) + h

    # --- MLP block (layernorm_after -> intermediate -> output + residual)
    ln2 = _layernorm(h, vrow(R_LN2_G, HIDDEN), vrow(R_LN2_B, HIDDEN), LN_EPS)
    inter = _gelu_tanh(jnp.dot(ln2, wi_ref[0], preferred_element_type=jnp.float32)
                       + vrow(R_BI, INTERMEDIATE))
    h = (jnp.dot(inter, wo2_ref[0], preferred_element_type=jnp.float32)
         + vrow(R_BO2, HIDDEN) + h)

    h_ref[...] = h

    @pl.when(l == pl.num_programs(1) - 1)
    def _():
        out_ref[0] = h.astype(out_ref.dtype)


# ------------------------------ pallas_call wrapper ---------------------------
def _run_encoder(perm, x, packed):
    B, N, H = x.shape
    L = packed["pw"].shape[0]

    def wmap(nd):
        trailing = (0,) * (nd - 1)
        return lambda b, l, perm_ref: (perm_ref[l],) + trailing

    in_specs = [
        pl.BlockSpec((1, N, H), lambda b, l, perm_ref: (b, 0, 0)),              # x
        pl.BlockSpec((1, 1, POS_DIM), lambda b, l, perm_ref: (l, 0, 0)),        # depth emb (slot l)
        pl.BlockSpec((1, VEC_ROWS, LANE), wmap(3)),                             # vt
        pl.BlockSpec((1, 2, HIDDEN, HIDDEN), wmap(4)),                          # pw (split halves)
        pl.BlockSpec((1, 3 * NUM_HEADS, HIDDEN, LANE), wmap(4)),                # per-head qkv weights
        pl.BlockSpec((1, NUM_HEADS, LANE, HIDDEN), wmap(4)),                    # per-head out proj
        pl.BlockSpec((1, HIDDEN, INTERMEDIATE), wmap(3)),                       # wi
        pl.BlockSpec((1, INTERMEDIATE, HIDDEN), wmap(3)),                       # wo2
    ]

    grid_spec = pltpu.PrefetchScalarGridSpec(
        num_scalar_prefetch=1,
        grid=(B, L),                                  # batch "parallel", layers "arbitrary"
        in_specs=in_specs,
        out_specs=pl.BlockSpec((1, N, H), lambda b, l, perm_ref: (b, 0, 0)),
        scratch_shapes=[pltpu.VMEM((N, HIDDEN), jnp.float32)],   # layer-carried activation
    )

    # Advisory cost hint so XLA overlaps surrounding HLO with this latency-bound kernel.
    mm_flops = (2 * N * HIDDEN * HIDDEN * 2
                + 3 * NUM_HEADS * 2 * N * HIDDEN * LANE
                + NUM_HEADS * (2 * N * LANE * N + 2 * N * N * LANE + 2 * N * LANE * HIDDEN)
                + 2 * N * HIDDEN * INTERMEDIATE + 2 * N * INTERMEDIATE * HIDDEN)
    elem_flops = 40 * N * HIDDEN + 10 * N * INTERMEDIATE
    flops = int(B * L * (mm_flops + elem_flops))
    transcendentals = int(B * L * (NUM_HEADS * N * N + N * (HIDDEN + INTERMEDIATE)
                                   + NUM_HEADS * N + 3 * N))
    w_bytes = sum(int(packed[k][0].size) for k in
                  ("vt", "pw", "wqkv", "wo", "wi", "wo2", "emb")) * 4
    bytes_accessed = int(B * L * w_bytes + 2 * B * N * HIDDEN * 4)
    cost = pl.CostEstimate(flops=flops, transcendentals=transcendentals,
                           bytes_accessed=bytes_accessed)

    return pl.pallas_call(
        _encoder_kernel,
        out_shape=jax.ShapeDtypeStruct((B, N, H), x.dtype),
        grid_spec=grid_spec,
        compiler_params=pltpu.CompilerParams(
            dimension_semantics=("parallel", "arbitrary")),
        cost_estimate=cost,
    )(perm, x, packed["emb"], packed["vt"], packed["pw"], packed["wqkv"],
      packed["wo"], packed["wi"], packed["wo2"])


# --------------------------- parameter packing --------------------------------
def pack_params(layer_params, emb_weight):
    """Stack per-layer weights along a leading L axis, fold the 1/sqrt(head_dim)
    scale into Q, zero-pad per-head Q/K/V/Wo slabs to 128 lanes (lane-dense,
    exact), split the projection weight into h/emb halves, and pack every small
    vector into one (L, 24, 128) table."""
    scale = 1.0 / math.sqrt(HEAD_DIM)

    def pad_row(v):
        return jnp.pad(v, (0, LANE - v.shape[0]))

    def pad_cols(w):          # (H, HEAD_DIM) -> (H, 128)
        return jnp.pad(w, ((0, 0), (0, LANE - w.shape[1])))

    def pad_rows(w):          # (HEAD_DIM, H) -> (128, H)
        return jnp.pad(w, ((0, LANE - w.shape[0]), (0, 0)))

    vt_l, pw_l, wqkv_l, wo_l, wi_l, wo2_l = [], [], [], [], [], []
    for p in layer_params:
        wq, bq = p["wq"] * scale, p["bq"] * scale
        seg_w, seg_b = [], []
        for w, b in ((wq, bq), (p["wk"], p["bk"]), (p["wv"], p["bv"])):
            for hh in range(NUM_HEADS):
                lo, hi = hh * HEAD_DIM, (hh + 1) * HEAD_DIM
                seg_w.append(pad_cols(w[:, lo:hi]))
                seg_b.append(b[lo:hi])
        wqkv_l.append(jnp.stack(seg_w))                                   # (6, H, 128)

        wo_l.append(jnp.stack([pad_rows(p["wo"][hh * HEAD_DIM:(hh + 1) * HEAD_DIM, :])
                               for hh in range(NUM_HEADS)]))              # (2, 128, H)
        pw_l.append(jnp.stack([p["pw"][:HIDDEN, :], p["pw"][HIDDEN:, :]]))  # (2, H, H)

        rows = ([p["pln_g"][:HIDDEN], p["pln_g"][HIDDEN:],
                 p["pln_b"][:HIDDEN], p["pln_b"][HIDDEN:],
                 p["pb"], p["ln1_g"], p["ln1_b"]]
                + seg_b
                + [p["bo"], p["ln2_g"], p["ln2_b"], p["bi"], p["bo2"]])
        tbl = jnp.stack([pad_row(r) for r in rows])
        vt_l.append(jnp.pad(tbl, ((0, VEC_ROWS - tbl.shape[0]), (0, 0))))

        wi_l.append(p["wi"])
        wo2_l.append(p["wo2"])

    f32 = jnp.float32
    return dict(
        emb=emb_weight[:, None, :].astype(f32),            # (L, 1, POS_DIM)
        vt=jnp.stack(vt_l).astype(f32),                     # (L, 24, 128)
        pw=jnp.stack(pw_l).astype(f32),                     # (L, 2, H, H)
        wqkv=jnp.stack(wqkv_l).astype(f32),                 # (L, 6, H, 128)
        wo=jnp.stack(wo_l).astype(f32),                     # (L, 2, 128, H)
        wi=jnp.stack(wi_l).astype(f32),                     # (L, H, I)
        wo2=jnp.stack(wo2_l).astype(f32),                   # (L, I, H)
    )


# ----------------------------- public forward ---------------------------------
@functools.partial(jax.jit, static_argnames=("shuffle",))
def position_encoding_deit_encoder(hidden_states, packed, shuffle_key, shuffle=True):
    """PositionEncodingDeiTEncoder.forward (return_dict path -> last_hidden_state).
    head_mask=None path only.
    # TODO(synk): output_attentions / output_hidden_states tuple bookkeeping is
    # python-level, compute-free, and omitted here.
    """
    L = packed["pw"].shape[0]
    if shuffle:
        # torch.randperm equivalent; stays on device (SMEM scalar prefetch).
        perm = jax.random.permutation(shuffle_key, L).astype(jnp.int32)
    else:
        perm = jnp.arange(L, dtype=jnp.int32)
    return _run_encoder(perm, hidden_states, packed)


# --------------------------- pure-JAX reference --------------------------------
def _reference_encoder(x, layer_params, emb_weight, idx_order):
    h = x
    B, N, _ = x.shape
    for i, li in enumerate(idx_order):
        p = layer_params[li]
        demb = jnp.broadcast_to(emb_weight[i][None, None, :], (B, N, POS_DIM))
        xc = jnp.concatenate([h, demb], axis=-1)
        xn = _layernorm(xc, p["pln_g"], p["pln_b"], PROJ_LN_EPS)
        h = _gelu_exact(xn @ p["pw"] + p["pb"]) + h

        ln1 = _layernorm(h, p["ln1_g"], p["ln1_b"], LN_EPS)
        q = ln1 @ p["wq"] + p["bq"]
        k = ln1 @ p["wk"] + p["bk"]
        v = ln1 @ p["wv"] + p["bv"]
        qh = q.reshape(B, N, NUM_HEADS, HEAD_DIM)
        kh = k.reshape(B, N, NUM_HEADS, HEAD_DIM)
        vh = v.reshape(B, N, NUM_HEADS, HEAD_DIM)
        s = jnp.einsum('bnhd,bmhd->bhnm', qh, kh) / math.sqrt(HEAD_DIM)
        a = jax.nn.softmax(s, axis=-1)
        ctx = jnp.einsum('bhnm,bmhd->bnhd', a, vh).reshape(B, N, HIDDEN)
        h = ctx @ p["wo"] + p["bo"] + h

        ln2 = _layernorm(h, p["ln2_g"], p["ln2_b"], LN_EPS)
        inter = _gelu_exact(ln2 @ p["wi"] + p["bi"])
        h = inter @ p["wo2"] + p["bo2"] + h
    return h


# --------------------------------- init ----------------------------------------
def init_layer_params(key):
    ks = jax.random.split(key, 10)

    def lin(k, fan_in, fan_out):
        kw, kb = jax.random.split(k)
        w = jax.random.normal(kw, (fan_in, fan_out), jnp.float32) * 0.02
        b = jax.random.normal(kb, (fan_out,), jnp.float32) * 0.02
        return w, b

    def ln(k, d):
        kg, kb = jax.random.split(k)
        g = 1.0 + 0.02 * jax.random.normal(kg, (d,), jnp.float32)
        b = 0.02 * jax.random.normal(kb, (d,), jnp.float32)
        return g, b

    pw, pb = lin(ks[0], HIDDEN + POS_DIM, HIDDEN)
    wq, bq = lin(ks[1], HIDDEN, HIDDEN)
    wk, bk = lin(ks[2], HIDDEN, HIDDEN)
    wv, bv = lin(ks[3], HIDDEN, HIDDEN)
    wo, bo = lin(ks[4], HIDDEN, HIDDEN)
    wi, bi = lin(ks[5], HIDDEN, INTERMEDIATE)
    wo2, bo2 = lin(ks[6], INTERMEDIATE, HIDDEN)
    pln_g, pln_b = ln(ks[7], HIDDEN + POS_DIM)
    ln1_g, ln1_b = ln(ks[8], HIDDEN)
    ln2_g, ln2_b = ln(ks[9], HIDDEN)
    return dict(
        pln_g=pln_g, pln_b=pln_b, pw=pw, pb=pb,
        ln1_g=ln1_g, ln1_b=ln1_b,
        wq=wq, bq=bq, wk=wk, bk=bk, wv=wv, bv=bv,
        wo=wo, bo=bo,
        ln2_g=ln2_g, ln2_b=ln2_b,
        wi=wi, bi=bi, wo2=wo2, bo2=bo2,
    )


if __name__ == "__main__":
    B, N = 2, 8
    key = jax.random.PRNGKey(0)
    keys = jax.random.split(key, 3 + NUM_LAYERS)
    kx, kemb, kshuf = keys[0], keys[1], keys[2]
    layer_keys = keys[3:]

    x = jax.random.normal(kx, (B, N, HIDDEN), jnp.float32)
    layer_params = [init_layer_params(k) for k in layer_keys]
    # The PyTorch module zero-inits the depth embedding (it is learned later);
    # use small random values here so the depth-embedding path is exercised.
    emb_weight = 0.02 * jax.random.normal(kemb, (NUM_LAYERS, POS_DIM), jnp.float32)

    packed = pack_params(layer_params, emb_weight)

    # correctness: deterministic (no-shuffle) order vs. pure-JAX reference
    out_noshuf = position_encoding_deit_encoder(x, packed, kshuf, shuffle=False)
    ref_noshuf = _reference_encoder(x, layer_params, emb_weight, list(range(NUM_LAYERS)))
    err0 = float(jnp.max(jnp.abs(out_noshuf - ref_noshuf)))
    assert jnp.allclose(out_noshuf, ref_noshuf, rtol=1e-2, atol=1e-2), err0

    # shuffled forward (layer order permuted on device from kshuf)
    out = position_encoding_deit_encoder(x, packed, kshuf, shuffle=True)
    out = jax.block_until_ready(out)

    # verify permuted-weight selection (index_map with perm_ref[l]) vs. reference
    # (device_get here is test-harness only; the forward itself never syncs)
    perm_host = [int(i) for i in jax.device_get(
        jax.random.permutation(kshuf, NUM_LAYERS))]
    ref_shuf = _reference_encoder(x, layer_params, emb_weight, perm_host)
    err1 = float(jnp.max(jnp.abs(out - ref_shuf)))
    assert jnp.allclose(out, ref_shuf, rtol=1e-2, atol=1e-2), err1

    assert out.shape == (B, N, HIDDEN)
    assert bool(jnp.all(jnp.isfinite(out)))
    print("KERNEL_OK")
</pallas_src>

<mosaic_0001>
module attributes {stable_mosaic.version = 11 : i64} {
  func.func @_encoder_kernel(%arg0: i32, %arg1: i32, %arg2: memref<3xi32, #tpu.memory_space<smem>>, %arg3: memref<1x8x32xf32, #tpu.memory_space<vmem>>, %arg4: memref<1x1x32xf32, #tpu.memory_space<vmem>>, %arg5: memref<1x24x128xf32, #tpu.memory_space<vmem>>, %arg6: memref<1x2x32x32xf32, #tpu.memory_space<vmem>>, %arg7: memref<1x6x32x128xf32, #tpu.memory_space<vmem>>, %arg8: memref<1x2x128x32xf32, #tpu.memory_space<vmem>>, %arg9: memref<1x32x64xf32, #tpu.memory_space<vmem>>, %arg10: memref<1x64x32xf32, #tpu.memory_space<vmem>>, %arg11: memref<1x8x32xf32, #tpu.memory_space<vmem>>, %arg12: memref<8x32xf32, #tpu.memory_space<vmem>>) attributes {dimension_semantics = [#tpu.dimension_semantics<parallel>, #tpu.dimension_semantics<arbitrary>], iteration_bounds = array<i64: 2, 3>, scalar_prefetch = 1 : i64, scratch_operands = 1 : i64, tpu.core_type = #tpu.core_type<tc>, window_params = [{transform_indices = @transform_0, window_bounds = array<i64: 1, 8, 32>}, {transform_indices = @transform_1, window_bounds = array<i64: 1, 1, 32>}, {transform_indices = @transform_2, window_bounds = array<i64: 1, 24, 128>}, {transform_indices = @transform_3, window_bounds = array<i64: 1, 2, 32, 32>}, {transform_indices = @transform_4, window_bounds = array<i64: 1, 6, 32, 128>}, {transform_indices = @transform_5, window_bounds = array<i64: 1, 2, 128, 32>}, {transform_indices = @transform_6, window_bounds = array<i64: 1, 32, 64>}, {transform_indices = @transform_7, window_bounds = array<i64: 1, 64, 32>}, {transform_indices = @transform_8, window_bounds = array<i64: 1, 8, 32>}]} {
    %c0_i32 = arith.constant 0 : i32
    %0 = arith.cmpi eq, %arg1, %c0_i32 : i32
    %1 = arith.extui %0 : i1 to i32
    %c0_i32_0 = arith.constant 0 : i32
    %2 = arith.cmpi ne, %1, %c0_i32_0 : i32
    scf.if %2 {
      %c0_96 = arith.constant 0 : index
      %c0_97 = arith.constant 0 : index
      %c0_98 = arith.constant 0 : index
      %218 = vector.load %arg3[%c0_96, %c0_97, %c0_98] : memref<1x8x32xf32, #tpu.memory_space<vmem>>, vector<1x8x32xf32>
      %219 = vector.shape_cast %218 : vector<1x8x32xf32> to vector<8x32xf32>
      %c0_99 = arith.constant 0 : index
      %c0_100 = arith.constant 0 : index
      %220 = vector.load %arg12[%c0_99, %c0_100] : memref<8x32xf32, #tpu.memory_space<vmem>>, vector<8x32xf32>
      tpu.vector_store %arg12[%c0_99, %c0_100], %219 {strides = array<i32>} : memref<8x32xf32, #tpu.memory_space<vmem>>, vector<8x32xf32>,
    } else {
    }
    %c0 = arith.constant 0 : index
    %c0_1 = arith.constant 0 : index
    %3 = vector.load %arg12[%c0, %c0_1] : memref<8x32xf32, #tpu.memory_space<vmem>>, vector<8x32xf32>
    %c0_2 = arith.constant 0 : index
    %c0_3 = arith.constant 0 : index
    %c0_4 = arith.constant 0 : index
    %4 = vector.load %arg5[%c0_2, %c0_3, %c0_4] : memref<1x24x128xf32, #tpu.memory_space<vmem>>, vector<1x24x128xf32>
    %5 = vector.shape_cast %4 : vector<1x24x128xf32> to vector<24x128xf32>
    %c0_5 = arith.constant 0 : index
    %c0_6 = arith.constant 0 : index
    %c0_7 = arith.constant 0 : index
    %6 = vector.load %arg4[%c0_5, %c0_6, %c0_7] : memref<1x1x32xf32, #tpu.memory_space<vmem>>, vector<1x1x32xf32>
    %7 = vector.shape_cast %6 : vector<1x1x32xf32> to vector<1x32xf32>
    %cst = arith.constant dense<0.000000e+00> : vector<1xf32>
    %8 = vector.multi_reduction <add>, %7, %cst [1] : vector<1x32xf32> to vector<1xf32>
    %9 = vector.shape_cast %8 : vector<1xf32> to vector<1x1xf32>
    %cst_8 = arith.constant dense<0.000000e+00> : vector<8xf32>
    %10 = vector.multi_reduction <add>, %3, %cst_8 [1] : vector<8x32xf32> to vector<8xf32>
    %11 = vector.shape_cast %10 : vector<8xf32> to vector<8x1xf32>
    %12 = vector.broadcast %9 : vector<1x1xf32> to vector<8x1xf32>
    %13 = arith.addf %11, %12 : vector<8x1xf32>
    %cst_9 = arith.constant 6.400000e+01 : f32
    %14 = vector.broadcast %cst_9 : f32 to vector<8x1xf32>
    %15 = arith.divf %13, %14 : vector<8x1xf32>
    %16 = vector.broadcast %15 : vector<8x1xf32> to vector<8x32xf32>
    %17 = arith.subf %3, %16 : vector<8x32xf32>
    %18 = vector.broadcast %7 : vector<1x32xf32> to vector<8x32xf32>
    %19 = vector.broadcast %15 : vector<8x1xf32> to vector<8x32xf32>
    %20 = arith.subf %18, %19 : vector<8x32xf32>
    %21 = arith.mulf %17, %17 : vector<8x32xf32>
    %cst_10 = arith.constant dense<0.000000e+00> : vector<8xf32>
    %22 = vector.multi_reduction <add>, %21, %cst_10 [1] : vector<8x32xf32> to vector<8xf32>
    %23 = vector.shape_cast %22 : vector<8xf32> to vector<8x1xf32>
    %24 = arith.mulf %20, %20 : vector<8x32xf32>
    %cst_11 = arith.constant dense<0.000000e+00> : vector<8xf32>
    %25 = vector.multi_reduction <add>, %24, %cst_11 [1] : vector<8x32xf32> to vector<8xf32>
    %26 = vector.shape_cast %25 : vector<8xf32> to vector<8x1xf32>
    %27 = arith.addf %23, %26 : vector<8x1xf32>
    %cst_12 = arith.constant 6.400000e+01 : f32
    %28 = vector.broadcast %cst_12 : f32 to vector<8x1xf32>
    %29 = arith.divf %27, %28 : vector<8x1xf32>
    %cst_13 = arith.constant 9.99999974E-6 : f32
    %30 = vector.broadcast %cst_13 : f32 to vector<8x1xf32>
    %31 = arith.addf %29, %30 : vector<8x1xf32>
    %32 = math.rsqrt %31 : vector<8x1xf32>
    %33 = vector.broadcast %32 : vector<8x1xf32> to vector<8x32xf32>
    %34 = arith.mulf %17, %33 : vector<8x32xf32>
    %35 = vector.extract_strided_slice %5 {offsets = [0, 0], sizes = [1, 32], strides = [1, 1]} : vector<24x128xf32> to vector<1x32xf32>
    %36 = vector.broadcast %35 : vector<1x32xf32> to vector<8x32xf32>
    %37 = arith.mulf %34, %36 : vector<8x32xf32>
    %38 = vector.extract_strided_slice %5 {offsets = [2, 0], sizes = [1, 32], strides = [1, 1]} : vector<24x128xf32> to vector<1x32xf32>
    %39 = vector.broadcast %38 : vector<1x32xf32> to vector<8x32xf32>
    %40 = arith.addf %37, %39 : vector<8x32xf32>
    %41 = vector.broadcast %32 : vector<8x1xf32> to vector<8x32xf32>
    %42 = arith.mulf %20, %41 : vector<8x32xf32>
    %43 = vector.extract_strided_slice %5 {offsets = [1, 0], sizes = [1, 32], strides = [1, 1]} : vector<24x128xf32> to vector<1x32xf32>
    %44 = vector.broadcast %43 : vector<1x32xf32> to vector<8x32xf32>
    %45 = arith.mulf %42, %44 : vector<8x32xf32>
    %46 = vector.extract_strided_slice %5 {offsets = [3, 0], sizes = [1, 32], strides = [1, 1]} : vector<24x128xf32> to vector<1x32xf32>
    %47 = vector.broadcast %46 : vector<1x32xf32> to vector<8x32xf32>
    %48 = arith.addf %45, %47 : vector<8x32xf32>
    %c0_14 = arith.constant 0 : index
    %c0_15 = arith.constant 0 : index
    %c0_16 = arith.constant 0 : index
    %c0_17 = arith.constant 0 : index
    %49 = vector.load %arg6[%c0_14, %c0_15, %c0_16, %c0_17] : memref<1x2x32x32xf32, #tpu.memory_space<vmem>>, vector<1x1x32x32xf32>
    %50 = vector.shape_cast %49 : vector<1x1x32x32xf32> to vector<32x32xf32>
    %cst_18 = arith.constant dense<0.000000e+00> : vector<8x32xf32>
    %51 = tpu.matmul %40, %50, %cst_18 {dimension_numbers = #tpu.dot_dimension_numbers<[1], [0], [0], [1], [0, 0, 1, 1], [], []>} : vector<8x32xf32>, vector<32x32xf32>, vector<8x32xf32> -> vector<8x32xf32>
    %c0_19 = arith.constant 0 : index
    %c1 = arith.constant 1 : index
    %c0_20 = arith.constant 0 : index
    %c0_21 = arith.constant 0 : index
    %52 = vector.load %arg6[%c0_19, %c1, %c0_20, %c0_21] : memref<1x2x32x32xf32, #tpu.memory_space<vmem>>, vector<1x1x32x32xf32>
    %53 = vector.shape_cast %52 : vector<1x1x32x32xf32> to vector<32x32xf32>
    %cst_22 = arith.constant dense<0.000000e+00> : vector<8x32xf32>
    %54 = tpu.matmul %48, %53, %cst_22 {dimension_numbers = #tpu.dot_dimension_numbers<[1], [0], [0], [1], [0, 0, 1, 1], [], []>} : vector<8x32xf32>, vector<32x32xf32>, vector<8x32xf32> -> vector<8x32xf32>
    %55 = arith.addf %51, %54 : vector<8x32xf32>
    %56 = vector.extract_strided_slice %5 {offsets = [4, 0], sizes = [1, 32], strides = [1, 1]} : vector<24x128xf32> to vector<1x32xf32>
    %57 = vector.broadcast %56 : vector<1x32xf32> to vector<8x32xf32>
    %58 = arith.addf %55, %57 : vector<8x32xf32>
    %cst_23 = arith.constant 5.000000e-01 : f32
    %59 = vector.broadcast %cst_23 : f32 to vector<8x32xf32>
    %60 = arith.mulf %59, %58 : vector<8x32xf32>
    %cst_24 = arith.constant 4.471500e-02 : f32
    %61 = vector.broadcast %cst_24 : f32 to vector<8x32xf32>
    %62 = arith.mulf %61, %58 : vector<8x32xf32>
    %63 = arith.mulf %62, %58 : vector<8x32xf32>
    %64 = arith.mulf %63, %58 : vector<8x32xf32>
    %65 = arith.addf %58, %64 : vector<8x32xf32>
    %cst_25 = arith.constant 0.797884583 : f32
    %66 = vector.broadcast %cst_25 : f32 to vector<8x32xf32>
    %67 = arith.mulf %66, %65 : vector<8x32xf32>
    %68 = math.tanh %67 : vector<8x32xf32>
    %cst_26 = arith.constant 1.000000e+00 : f32
    %69 = vector.broadcast %cst_26 : f32 to vector<8x32xf32>
    %70 = arith.addf %69, %68 : vector<8x32xf32>
    %71 = arith.mulf %60, %70 : vector<8x32xf32>
    %72 = arith.addf %71, %3 : vector<8x32xf32>
    %73 = vector.extract_strided_slice %5 {offsets = [5, 0], sizes = [1, 32], strides = [1, 1]} : vector<24x128xf32> to vector<1x32xf32>
    %74 = vector.extract_strided_slice %5 {offsets = [6, 0], sizes = [1, 32], strides = [1, 1]} : vector<24x128xf32> to vector<1x32xf32>
    %cst_27 = arith.constant dense<0.000000e+00> : vector<8xf32>
    %75 = vector.multi_reduction <add>, %72, %cst_27 [1] : vector<8x32xf32> to vector<8xf32>
    %76 = vector.shape_cast %75 : vector<8xf32> to vector<8x1xf32>
    %cst_28 = arith.constant 3.200000e+01 : f32
    %77 = vector.broadcast %cst_28 : f32 to vector<8x1xf32>
    %78 = arith.divf %76, %77 : vector<8x1xf32>
    %79 = vector.broadcast %78 : vector<8x1xf32> to vector<8x32xf32>
    %80 = arith.subf %72, %79 : vector<8x32xf32>
    %81 = arith.mulf %80, %80 : vector<8x32xf32>
    %cst_29 = arith.constant dense<0.000000e+00> : vector<8xf32>
    %82 = vector.multi_reduction <add>, %81, %cst_29 [1] : vector<8x32xf32> to vector<8xf32>
    %83 = vector.shape_cast %82 : vector<8xf32> to vector<8x1xf32>
    %cst_30 = arith.constant 3.200000e+01 : f32
    %84 = vector.broadcast %cst_30 : f32 to vector<8x1xf32>
    %85 = arith.divf %83, %84 : vector<8x1xf32>
    %cst_31 = arith.constant 9.99999996E-13 : f32
    %86 = vector.broadcast %cst_31 : f32 to vector<8x1xf32>
    %87 = arith.addf %85, %86 : vector<8x1xf32>
    %88 = math.rsqrt %87 : vector<8x1xf32>
    %89 = vector.broadcast %88 : vector<8x1xf32> to vector<8x32xf32>
    %90 = arith.mulf %80, %89 : vector<8x32xf32>
    %91 = vector.broadcast %73 : vector<1x32xf32> to vector<8x32xf32>
    %92 = arith.mulf %90, %91 : vector<8x32xf32>
    %93 = vector.broadcast %74 : vector<1x32xf32> to vector<8x32xf32>
    %94 = arith.addf %92, %93 : vector<8x32xf32>
    %c0_32 = arith.constant 0 : index
    %c0_33 = arith.constant 0 : index
    %c0_34 = arith.constant 0 : index
    %c0_35 = arith.constant 0 : index
    %95 = vector.load %arg7[%c0_32, %c0_33, %c0_34, %c0_35] : memref<1x6x32x128xf32, #tpu.memory_space<vmem>>, vector<1x1x32x128xf32>
    %96 = vector.shape_cast %95 : vector<1x1x32x128xf32> to vector<32x128xf32>
    %cst_36 = arith.constant dense<0.000000e+00> : vector<8x128xf32>
    %97 = tpu.matmul %94, %96, %cst_36 {dimension_numbers = #tpu.dot_dimension_numbers<[1], [0], [0], [1], [0, 0, 1, 1], [], []>} : vector<8x32xf32>, vector<32x128xf32>, vector<8x128xf32> -> vector<8x128xf32>
    %98 = vector.extract_strided_slice %5 {offsets = [7, 0], sizes = [1, 128], strides = [1, 1]} : vector<24x128xf32> to vector<1x128xf32>
    %99 = vector.broadcast %98 : vector<1x128xf32> to vector<8x128xf32>
    %100 = arith.addf %97, %99 : vector<8x128xf32>
    %c0_37 = arith.constant 0 : index
    %c2 = arith.constant 2 : index
    %c0_38 = arith.constant 0 : index
    %c0_39 = arith.constant 0 : index
    %101 = vector.load %arg7[%c0_37, %c2, %c0_38, %c0_39] : memref<1x6x32x128xf32, #tpu.memory_space<vmem>>, vector<1x1x32x128xf32>
    %102 = vector.shape_cast %101 : vector<1x1x32x128xf32> to vector<32x128xf32>
    %cst_40 = arith.constant dense<0.000000e+00> : vector<8x128xf32>
    %103 = tpu.matmul %94, %102, %cst_40 {dimension_numbers = #tpu.dot_dimension_numbers<[1], [0], [0], [1], [0, 0, 1, 1], [], []>} : vector<8x32xf32>, vector<32x128xf32>, vector<8x128xf32> -> vector<8x128xf32>
    %104 = vector.extract_strided_slice %5 {offsets = [9, 0], sizes = [1, 128], strides = [1, 1]} : vector<24x128xf32> to vector<1x128xf32>
    %105 = vector.broadcast %104 : vector<1x128xf32> to vector<8x128xf32>
    %106 = arith.addf %103, %105 : vector<8x128xf32>
    %c0_41 = arith.constant 0 : index
    %c4 = arith.constant 4 : index
    %c0_42 = arith.constant 0 : index
    %c0_43 = arith.constant 0 : index
    %107 = vector.load %arg7[%c0_41, %c4, %c0_42, %c0_43] : memref<1x6x32x128xf32, #tpu.memory_space<vmem>>, vector<1x1x32x128xf32>
    %108 = vector.shape_cast %107 : vector<1x1x32x128xf32> to vector<32x128xf32>
    %cst_44 = arith.constant dense<0.000000e+00> : vector<8x128xf32>
    %109 = tpu.matmul %94, %108, %cst_44 {dimension_numbers = #tpu.dot_dimension_numbers<[1], [0], [0], [1], [0, 0, 1, 1], [], []>} : vector<8x32xf32>, vector<32x128xf32>, vector<8x128xf32> -> vector<8x128xf32>
    %110 = vector.extract_strided_slice %5 {offsets = [11, 0], sizes = [1, 128], strides = [1, 1]} : vector<24x128xf32> to vector<1x128xf32>
    %111 = vector.broadcast %110 : vector<1x128xf32> to vector<8x128xf32>
    %112 = arith.addf %109, %111 : vector<8x128xf32>
    "tpu.trace_start"() <{level = 10 : i32, message = "nd,md->nm"}> : () -> ()
    %cst_45 = arith.constant dense<0.000000e+00> : vector<8x8xf32>
    %113 = tpu.matmul %100, %106, %cst_45 {dimension_numbers = #tpu.dot_dimension_numbers<[1], [1], [0], [0], [0, 0, 1, 0], [], []>} : vector<8x128xf32>, vector<8x128xf32>, vector<8x8xf32> -> vector<8x8xf32>
    "tpu.trace_stop"() : () -> ()
    %cst_46 = arith.constant dense<0xFF800000> : vector<8xf32>
    %114 = vector.multi_reduction <maximumf>, %113, %cst_46 [1] : vector<8x8xf32> to vector<8xf32>
    %115 = vector.shape_cast %114 : vector<8xf32> to vector<8x1xf32>
    %116 = vector.broadcast %115 : vector<8x1xf32> to vector<8x8xf32>
    %117 = arith.subf %113, %116 : vector<8x8xf32>
    %118 = math.exp %117 : vector<8x8xf32>
    %cst_47 = arith.constant dense<0.000000e+00> : vector<8xf32>
    %119 = vector.multi_reduction <add>, %118, %cst_47 [1] : vector<8x8xf32> to vector<8xf32>
    %120 = vector.shape_cast %119 : vector<8xf32> to vector<8x1xf32>
    %121 = tpu.reciprocal %120 {approx = true} : vector<8x1xf32> -> vector<8x1xf32>
    %122 = vector.broadcast %121 : vector<8x1xf32> to vector<8x8xf32>
    %123 = arith.mulf %118, %122 : vector<8x8xf32>
    %cst_48 = arith.constant dense<0.000000e+00> : vector<8x128xf32>
    %124 = tpu.matmul %123, %112, %cst_48 {dimension_numbers = #tpu.dot_dimension_numbers<[1], [0], [0], [1], [0, 0, 1, 1], [], []>} : vector<8x8xf32>, vector<8x128xf32>, vector<8x128xf32> -> vector<8x128xf32>
    %c0_49 = arith.constant 0 : index
    %c0_50 = arith.constant 0 : index
    %c0_51 = arith.constant 0 : index
    %c0_52 = arith.constant 0 : index
    %125 = vector.load %arg8[%c0_49, %c0_50, %c0_51, %c0_52] : memref<1x2x128x32xf32, #tpu.memory_space<vmem>>, vector<1x1x128x32xf32>
    %126 = vector.shape_cast %125 : vector<1x1x128x32xf32> to vector<128x32xf32>
    %cst_53 = arith.constant dense<0.000000e+00> : vector<8x32xf32>
    %127 = tpu.matmul %124, %126, %cst_53 {dimension_numbers = #tpu.dot_dimension_numbers<[1], [0], [0], [1], [0, 0, 1, 1], [], []>} : vector<8x128xf32>, vector<128x32xf32>, vector<8x32xf32> -> vector<8x32xf32>
    %c0_54 = arith.constant 0 : index
    %c1_55 = arith.constant 1 : index
    %c0_56 = arith.constant 0 : index
    %c0_57 = arith.constant 0 : index
    %128 = vector.load %arg7[%c0_54, %c1_55, %c0_56, %c0_57] : memref<1x6x32x128xf32, #tpu.memory_space<vmem>>, vector<1x1x32x128xf32>
    %129 = vector.shape_cast %128 : vector<1x1x32x128xf32> to vector<32x128xf32>
    %cst_58 = arith.constant dense<0.000000e+00> : vector<8x128xf32>
    %130 = tpu.matmul %94, %129, %cst_58 {dimension_numbers = #tpu.dot_dimension_numbers<[1], [0], [0], [1], [0, 0, 1, 1], [], []>} : vector<8x32xf32>, vector<32x128xf32>, vector<8x128xf32> -> vector<8x128xf32>
    %131 = vector.extract_strided_slice %5 {offsets = [8, 0], sizes = [1, 128], strides = [1, 1]} : vector<24x128xf32> to vector<1x128xf32>
    %132 = vector.broadcast %131 : vector<1x128xf32> to vector<8x128xf32>
    %133 = arith.addf %130, %132 : vector<8x128xf32>
    %c0_59 = arith.constant 0 : index
    %c3 = arith.constant 3 : index
    %c0_60 = arith.constant 0 : index
    %c0_61 = arith.constant 0 : index
    %134 = vector.load %arg7[%c0_59, %c3, %c0_60, %c0_61] : memref<1x6x32x128xf32, #tpu.memory_space<vmem>>, vector<1x1x32x128xf32>
    %135 = vector.shape_cast %134 : vector<1x1x32x128xf32> to vector<32x128xf32>
    %cst_62 = arith.constant dense<0.000000e+00> : vector<8x128xf32>
    %136 = tpu.matmul %94, %135, %cst_62 {dimension_numbers = #tpu.dot_dimension_numbers<[1], [0], [0], [1], [0, 0, 1, 1], [], []>} : vector<8x32xf32>, vector<32x128xf32>, vector<8x128xf32> -> vector<8x128xf32>
    %137 = vector.extract_strided_slice %5 {offsets = [10, 0], sizes = [1, 128], strides = [1, 1]} : vector<24x128xf32> to vector<1x128xf32>
    %138 = vector.broadcast %137 : vector<1x128xf32> to vector<8x128xf32>
    %139 = arith.addf %136, %138 : vector<8x128xf32>
    %c0_63 = arith.constant 0 : index
    %c5 = arith.constant 5 : index
    %c0_64 = arith.constant 0 : index
    %c0_65 = arith.constant 0 : index
    %140 = vector.load %arg7[%c0_63, %c5, %c0_64, %c0_65] : memref<1x6x32x128xf32, #tpu.memory_space<vmem>>, vector<1x1x32x128xf32>
    %141 = vector.shape_cast %140 : vector<1x1x32x128xf32> to vector<32x128xf32>
    %cst_66 = arith.constant dense<0.000000e+00> : vector<8x128xf32>
    %142 = tpu.matmul %94, %141, %cst_66 {dimension_numbers = #tpu.dot_dimension_numbers<[1], [0], [0], [1], [0, 0, 1, 1], [], []>} : vector<8x32xf32>, vector<32x128xf32>, vector<8x128xf32> -> vector<8x128xf32>
    %143 = vector.extract_strided_slice %5 {offsets = [12, 0], sizes = [1, 128], strides = [1, 1]} : vector<24x128xf32> to vector<1x128xf32>
    %144 = vector.broadcast %143 : vector<1x128xf32> to vector<8x128xf32>
    %145 = arith.addf %142, %144 : vector<8x128xf32>
    "tpu.trace_start"() <{level = 10 : i32, message = "nd,md->nm"}> : () -> ()
    %cst_67 = arith.constant dense<0.000000e+00> : vector<8x8xf32>
    %146 = tpu.matmul %133, %139, %cst_67 {dimension_numbers = #tpu.dot_dimension_numbers<[1], [1], [0], [0], [0, 0, 1, 0], [], []>} : vector<8x128xf32>, vector<8x128xf32>, vector<8x8xf32> -> vector<8x8xf32>
    "tpu.trace_stop"() : () -> ()
    %cst_68 = arith.constant dense<0xFF800000> : vector<8xf32>
    %147 = vector.multi_reduction <maximumf>, %146, %cst_68 [1] : vector<8x8xf32> to vector<8xf32>
    %148 = vector.shape_cast %147 : vector<8xf32> to vector<8x1xf32>
    %149 = vector.broadcast %148 : vector<8x1xf32> to vector<8x8xf32>
    %150 = arith.subf %146, %149 : vector<8x8xf32>
    %151 = math.exp %150 : vector<8x8xf32>
    %cst_69 = arith.constant dense<0.000000e+00> : vector<8xf32>
    %152 = vector.multi_reduction <add>, %151, %cst_69 [1] : vector<8x8xf32> to vector<8xf32>
    %153 = vector.shape_cast %152 : vector<8xf32> to vector<8x1xf32>
    %154 = tpu.reciprocal %153 {approx = true} : vector<8x1xf32> -> vector<8x1xf32>
    %155 = vector.broadcast %154 : vector<8x1xf32> to vector<8x8xf32>
    %156 = arith.mulf %151, %155 : vector<8x8xf32>
    %cst_70 = arith.constant dense<0.000000e+00> : vector<8x128xf32>
    %157 = tpu.matmul %156, %145, %cst_70 {dimension_numbers = #tpu.dot_dimension_numbers<[1], [0], [0], [1], [0, 0, 1, 1], [], []>} : vector<8x8xf32>, vector<8x128xf32>, vector<8x128xf32> -> vector<8x128xf32>
    %c0_71 = arith.constant 0 : index
    %c1_72 = arith.constant 1 : index
    %c0_73 = arith.constant 0 : index
    %c0_74 = arith.constant 0 : index
    %158 = vector.load %arg8[%c0_71, %c1_72, %c0_73, %c0_74] : memref<1x2x128x32xf32, #tpu.memory_space<vmem>>, vector<1x1x128x32xf32>
    %159 = vector.shape_cast %158 : vector<1x1x128x32xf32> to vector<128x32xf32>
    %cst_75 = arith.constant dense<0.000000e+00> : vector<8x32xf32>
    %160 = tpu.matmul %157, %159, %cst_75 {dimension_numbers = #tpu.dot_dimension_numbers<[1], [0], [0], [1], [0, 0, 1, 1], [], []>} : vector<8x128xf32>, vector<128x32xf32>, vector<8x32xf32> -> vector<8x32xf32>
    %161 = arith.addf %127, %160 : vector<8x32xf32>
    %162 = vector.extract_strided_slice %5 {offsets = [13, 0], sizes = [1, 32], strides = [1, 1]} : vector<24x128xf32> to vector<1x32xf32>
    %163 = vector.broadcast %162 : vector<1x32xf32> to vector<8x32xf32>
    %164 = arith.addf %161, %163 : vector<8x32xf32>
    %165 = arith.addf %164, %72 : vector<8x32xf32>
    %166 = vector.extract_strided_slice %5 {offsets = [14, 0], sizes = [1, 32], strides = [1, 1]} : vector<24x128xf32> to vector<1x32xf32>
    %167 = vector.extract_strided_slice %5 {offsets = [15, 0], sizes = [1, 32], strides = [1, 1]} : vector<24x128xf32> to vector<1x32xf32>
    %cst_76 = arith.constant dense<0.000000e+00> : vector<8xf32>
    %168 = vector.multi_reduction <add>, %165, %cst_76 [1] : vector<8x32xf32> to vector<8xf32>
    %169 = vector.shape_cast %168 : vector<8xf32> to vector<8x1xf32>
    %cst_77 = arith.constant 3.200000e+01 : f32
    %170 = vector.broadcast %cst_77 : f32 to vector<8x1xf32>
    %171 = arith.divf %169, %170 : vector<8x1xf32>
    %172 = vector.broadcast %171 : vector<8x1xf32> to vector<8x32xf32>
    %173 = arith.subf %165, %172 : vector<8x32xf32>
    %174 = arith.mulf %173, %173 : vector<8x32xf32>
    %cst_78 = arith.constant dense<0.000000e+00> : vector<8xf32>
    %175 = vector.multi_reduction <add>, %174, %cst_78 [1] : vector<8x32xf32> to vector<8xf32>
    %176 = vector.shape_cast %175 : vector<8xf32> to vector<8x1xf32>
    %cst_79 = arith.constant 3.200000e+01 : f32
    %177 = vector.broadcast %cst_79 : f32 to vector<8x1xf32>
    %178 = arith.divf %176, %177 : vector<8x1xf32>
    %cst_80 = arith.constant 9.99999996E-13 : f32
    %179 = vector.broadcast %cst_80 : f32 to vector<8x1xf32>
    %180 = arith.addf %178, %179 : vector<8x1xf32>
    %181 = math.rsqrt %180 : vector<8x1xf32>
    %182 = vector.broadcast %181 : vector<8x1xf32> to vector<8x32xf32>
    %183 = arith.mulf %173, %182 : vector<8x32xf32>
    %184 = vector.broadcast %166 : vector<1x32xf32> to vector<8x32xf32>
    %185 = arith.mulf %183, %184 : vector<8x32xf32>
    %186 = vector.broadcast %167 : vector<1x32xf32> to vector<8x32xf32>
    %187 = arith.addf %185, %186 : vector<8x32xf32>
    %c0_81 = arith.constant 0 : index
    %c0_82 = arith.constant 0 : index
    %c0_83 = arith.constant 0 : index
    %188 = vector.load %arg9[%c0_81, %c0_82, %c0_83] : memref<1x32x64xf32, #tpu.memory_space<vmem>>, vector<1x32x64xf32>
    %189 = vector.shape_cast %188 : vector<1x32x64xf32> to vector<32x64xf32>
    %cst_84 = arith.constant dense<0.000000e+00> : vector<8x64xf32>
    %190 = tpu.matmul %187, %189, %cst_84 {dimension_numbers = #tpu.dot_dimension_numbers<[1], [0], [0], [1], [0, 0, 1, 1], [], []>} : vector<8x32xf32>, vector<32x64xf32>, vector<8x64xf32> -> vector<8x64xf32>
    %191 = vector.extract_strided_slice %5 {offsets = [16, 0], sizes = [1, 64], strides = [1, 1]} : vector<24x128xf32> to vector<1x64xf32>
    %192 = vector.broadcast %191 : vector<1x64xf32> to vector<8x64xf32>
    %193 = arith.addf %190, %192 : vector<8x64xf32>
    %cst_85 = arith.constant 5.000000e-01 : f32
    %194 = vector.broadcast %cst_85 : f32 to vector<8x64xf32>
    %195 = arith.mulf %194, %193 : vector<8x64xf32>
    %cst_86 = arith.constant 4.471500e-02 : f32
    %196 = vector.broadcast %cst_86 : f32 to vector<8x64xf32>
    %197 = arith.mulf %196, %193 : vector<8x64xf32>
    %198 = arith.mulf %197, %193 : vector<8x64xf32>
    %199 = arith.mulf %198, %193 : vector<8x64xf32>
    %200 = arith.addf %193, %199 : vector<8x64xf32>
    %cst_87 = arith.constant 0.797884583 : f32
    %201 = vector.broadcast %cst_87 : f32 to vector<8x64xf32>
    %202 = arith.mulf %201, %200 : vector<8x64xf32>
    %203 = math.tanh %202 : vector<8x64xf32>
    %cst_88 = arith.constant 1.000000e+00 : f32
    %204 = vector.broadcast %cst_88 : f32 to vector<8x64xf32>
    %205 = arith.addf %204, %203 : vector<8x64xf32>
    %206 = arith.mulf %195, %205 : vector<8x64xf32>
    %c0_89 = arith.constant 0 : index
    %c0_90 = arith.constant 0 : index
    %c0_91 = arith.constant 0 : index
    %207 = vector.load %arg10[%c0_89, %c0_90, %c0_91] : memref<1x64x32xf32, #tpu.memory_space<vmem>>, vector<1x64x32xf32>
    %208 = vector.shape_cast %207 : vector<1x64x32xf32> to vector<64x32xf32>
    %cst_92 = arith.constant dense<0.000000e+00> : vector<8x32xf32>
    %209 = tpu.matmul %206, %208, %cst_92 {dimension_numbers = #tpu.dot_dimension_numbers<[1], [0], [0], [1], [0, 0, 1, 1], [], []>} : vector<8x64xf32>, vector<64x32xf32>, vector<8x32xf32> -> vector<8x32xf32>
    %210 = vector.extract_strided_slice %5 {offsets = [17, 0], sizes = [1, 32], strides = [1, 1]} : vector<24x128xf32> to vector<1x32xf32>
    %211 = vector.broadcast %210 : vector<1x32xf32> to vector<8x32xf32>
    %212 = arith.addf %209, %211 : vector<8x32xf32>
    %213 = arith.addf %212, %165 : vector<8x32xf32>
    %c0_93 = arith.constant 0 : index
    %c0_94 = arith.constant 0 : index
    %214 = vector.load %arg12[%c0_93, %c0_94] : memref<8x32xf32, #tpu.memory_space<vmem>>, vector<8x32xf32>
    tpu.vector_store %arg12[%c0_93, %c0_94], %213 {strides = array<i32>} : memref<8x32xf32, #tpu.memory_space<vmem>>, vector<8x32xf32>,
    %c2_i32 = arith.constant 2 : i32
    %215 = arith.cmpi eq, %arg1, %c2_i32 : i32
    %216 = arith.extui %215 : i1 to i32
    %c0_i32_95 = arith.constant 0 : i32
    %217 = arith.cmpi ne, %216, %c0_i32_95 : i32
    scf.if %217 {
      %c0_96 = arith.constant 0 : index
      %c0_97 = arith.constant 0 : index
      %c0_98 = arith.constant 0 : index
      %218 = vector.load %arg11[%c0_96, %c0_97, %c0_98] : memref<1x8x32xf32, #tpu.memory_space<vmem>>, vector<1x8x32xf32>
      %219 = vector.shape_cast %218 : vector<1x8x32xf32> to vector<8x32xf32>
      %220 = vector.shape_cast %213 : vector<8x32xf32> to vector<1x8x32xf32>
      tpu.vector_store %arg11[%c0_96, %c0_97, %c0_98], %220 {strides = array<i32>} : memref<1x8x32xf32, #tpu.memory_space<vmem>>, vector<1x8x32xf32>,
    } else {
    }
    return
  }
  func.func @transform_0(%arg0: i32, %arg1: i32, %arg2: memref<3xi32, #tpu.memory_space<smem>>) -> (i32, i32, i32) {
    %c0_i32 = arith.constant 0 : i32
    %c0_i32_0 = arith.constant 0 : i32
    %c0_i32_1 = arith.constant 0 : i32
    return %arg0, %c0_i32, %c0_i32_0 : i32, i32, i32
  }
  func.func @transform_1(%arg0: i32, %arg1: i32, %arg2: memref<3xi32, #tpu.memory_space<smem>>) -> (i32, i32, i32) {
    %c0_i32 = arith.constant 0 : i32
    %c0_i32_0 = arith.constant 0 : i32
    %c0_i32_1 = arith.constant 0 : i32
    return %arg1, %c0_i32, %c0_i32_0 : i32, i32, i32
  }
  func.func @transform_2(%arg0: i32, %arg1: i32, %arg2: memref<3xi32, #tpu.memory_space<smem>>) -> (i32, i32, i32) {
    %0 = arith.index_cast %arg1 : i32 to index
    %1 = memref.load %arg2[%0] : memref<3xi32, #tpu.memory_space<smem>>
    %c0_i32 = arith.constant 0 : i32
    %c0_i32_0 = arith.constant 0 : i32
    %c0_i32_1 = arith.constant 0 : i32
    return %1, %c0_i32, %c0_i32_0 : i32, i32, i32
  }
  func.func @transform_3(%arg0: i32, %arg1: i32, %arg2: memref<3xi32, #tpu.memory_space<smem>>) -> (i32, i32, i32, i32) {
    %0 = arith.index_cast %arg1 : i32 to index
    %1 = memref.load %arg2[%0] : memref<3xi32, #tpu.memory_space<smem>>
    %c0_i32 = arith.constant 0 : i32
    %c0_i32_0 = arith.constant 0 : i32
    %c0_i32_1 = arith.constant 0 : i32
    %c0_i32_2 = arith.constant 0 : i32
    return %1, %c0_i32, %c0_i32_0, %c0_i32_1 : i32, i32, i32, i32
  }
  func.func @transform_4(%arg0: i32, %arg1: i32, %arg2: memref<3xi32, #tpu.memory_space<smem>>) -> (i32, i32, i32, i32) {
    %0 = arith.index_cast %arg1 : i32 to index
    %1 = memref.load %arg2[%0] : memref<3xi32, #tpu.memory_space<smem>>
    %c0_i32 = arith.constant 0 : i32
    %c0_i32_0 = arith.constant 0 : i32
    %c0_i32_1 = arith.constant 0 : i32
    %c0_i32_2 = arith.constant 0 : i32
    return %1, %c0_i32, %c0_i32_0, %c0_i32_1 : i32, i32, i32, i32
  }
  func.func @transform_5(%arg0: i32, %arg1: i32, %arg2: memref<3xi32, #tpu.memory_space<smem>>) -> (i32, i32, i32, i32) {
    %0 = arith.index_cast %arg1 : i32 to index
    %1 = memref.load %arg2[%0] : memref<3xi32, #tpu.memory_space<smem>>
    %c0_i32 = arith.constant 0 : i32
    %c0_i32_0 = arith.constant 0 : i32
    %c0_i32_1 = arith.constant 0 : i32
    %c0_i32_2 = arith.constant 0 : i32
    return %1, %c0_i32, %c0_i32_0, %c0_i32_1 : i32, i32, i32, i32
  }
  func.func @transform_6(%arg0: i32, %arg1: i32, %arg2: memref<3xi32, #tpu.memory_space<smem>>) -> (i32, i32, i32) {
    %0 = arith.index_cast %arg1 : i32 to index
    %1 = memref.load %arg2[%0] : memref<3xi32, #tpu.memory_space<smem>>
    %c0_i32 = arith.constant 0 : i32
    %c0_i32_0 = arith.constant 0 : i32
    %c0_i32_1 = arith.constant 0 : i32
    return %1, %c0_i32, %c0_i32_0 : i32, i32, i32
  }
  func.func @transform_7(%arg0: i32, %arg1: i32, %arg2: memref<3xi32, #tpu.memory_space<smem>>) -> (i32, i32, i32) {
    %0 = arith.index_cast %arg1 : i32 to index
    %1 = memref.load %arg2[%0] : memref<3xi32, #tpu.memory_space<smem>>
    %c0_i32 = arith.constant 0 : i32
    %c0_i32_0 = arith.constant 0 : i32
    %c0_i32_1 = arith.constant 0 : i32
    return %1, %c0_i32, %c0_i32_0 : i32, i32, i32
  }
  func.func @transform_8(%arg0: i32, %arg1: i32, %arg2: memref<3xi32, #tpu.memory_space<smem>>) -> (i32, i32, i32) {
    %c0_i32 = arith.constant 0 : i32
    %c0_i32_0 = arith.constant 0 : i32
    %c0_i32_1 = arith.constant 0 : i32
    return %arg0, %c0_i32, %c0_i32_0 : i32, i32, i32
  }
}

</mosaic_0001>

<bundles_post_ra>
// kernel: position_encoding_deit_encoder.1
= control target key start
LH: loop header
LB: loop body
LE: loop exit
PB: predicated region body
PF: predicated region fallthrough
CT: control target
= control target key end

     0   :  { %s1565_s12 = smov [#allocation4]   ;;  %s1943_s0 = inlined_call_operand.vmem [shape: s32[3], index: 0, kind: input, shape index: {}]   ;;  %s1944_s1 = inlined_call_operand.vmem [shape: f32[2,8,32], index: 1, kind: input, shape index: {}]   ;;  %s1945_s2 = inlined_call_operand.vmem [shape: f32[3,1,32], index: 2, kind: input, shape index: {}]   ;;  %s1946_s3 = inlined_call_operand.vmem [shape: f32[3,24,128], index: 3, kind: input, shape index: {}]   ;;  %s1947_s4 = inlined_call_operand.vmem [shape: f32[3,2,32,32], index: 4, kind: input, shape index: {}]   ;;  %s1948_s5 = inlined_call_operand.vmem [shape: f32[3,6,32,128], index: 5, kind: input, shape index: {}]   ;;  %s1949_s6 = inlined_call_operand.vmem [shape: f32[3,2,128,32], index: 6, kind: input, shape index: {}]   ;;  %s1950_s7 = inlined_call_operand.vmem [shape: f32[3,32,64], index: 7, kind: input, shape index: {}]   ;;  %s1951_s8 = inlined_call_operand.vmem [shape: f32[3,64,32], index: 8, kind: input, shape index: {}]   ;;  %s1952_s9 = inlined_call_operand.hbm [shape: f32[2,8,32], index: 9, kind: output, shape index: {}]  }
   0x1   :  { %1962 = sst [smem:[#allocation18_spill]] %s1944_s1  ;;  %s15_s11 = sshll.u32 %s1943_s0, 4  ;;  %s16_s11 = int_to_ptr.vmem [resolvable:$true] %s15_s11 }
   0x2   :  { %1963 = sst [smem:[#allocation19_spill]] %s1945_s2 }
   0x3   :  { %1964 = sst [smem:[#allocation20_spill]] %s1946_s3 }
   0x4   :  { %1965 = sst [smem:[#allocation21_spill]] %s1947_s4 }
   0x5   :  { %18 = dma.vmem_to_smem %s16_s11, 16, %s1565_s12, [#allocation3] }
   0x6   :  { %1527 = dma.done.wait [#allocation3], 16 }
   0x7   :  { %1528 = vsyncadd [#allocation3], 4294967280 }
   0x8   :  { %21 = sfence }
   0x9   :  { %22 = vsyncpa [#allocation6], 0 }
   0xa   :  { %24 = vsyncpa [#allocation6 + $0x1], 0  ;;  %s1621_s13 = smov 0   ;;  %s1623_s14 = smov 0  }
   0xb   :  { %s1625_s15 = smov 0   ;;  %s1627_s16 = smov 0  }
   0xc   :  { %s1629_s17 = smov 0   ;;  %s1631_s18 = smov 0  }
   0xd   :  { %s1633_s0 = smov 0   ;;  %s1635_s19 = smov 0  }
   0xe LB: > { %1966 = sst [smem:[#allocation9_spill]] %s1535_s13  ;;  %s1277_s20 = sadd.s32 4294967295, %s1563_s19   ;;  %s1563_s19 = sphi %s1635_s19, %s30_s19   ;;  %s1559_s0 = sphi %s1633_s0, %s1990_s0   ;;  %s1555_s18 = sphi %s1631_s18, %s1989_s18   ;;  %s1551_s17 = sphi %s1629_s17, %s1988_s17   ;;  %s1547_s16 = sphi %s1627_s16, %s1987_s16   ;;  %s1543_s15 = sphi %s1625_s15, %s1986_s15   ;;  %s1539_s14 = sphi %s1623_s14, %s1992_s14   ;;  %s1535_s13 = sphi %s1621_s13, %s1991_s13  }
   0xf   : > { %1967 = sst [smem:[#allocation10_spill]] %s1543_s15  ;;  %s1278_s21 = sadd.s32 4294967294, %s1563_s19  }
  0x10   : > { %1968 = sst [smem:[#allocation11_spill]] %s1555_s18  ;;  %s39_s22 = sadd.s32 1, %s1555_s18 }
  0x11   : > { %1969 = sst [smem:[#allocation12_spill]] %s1559_s0  ;;  %p40_p0 = scmp.ge.s32.totalorder %s39_s22, 3 }
  0x12   : > { %1970 = sst [smem:[#allocation13_spill]] %s1563_s19  ;;  %s42_s23 = sadd.s32 1, %s1559_s0 }
  0x13   : > { %p279_p1 = scmp.ne.s32.totalorder %s1543_s15, %s1539_s14  ;;  %p280_p2 = scmp.eq.s32.totalorder %s1277_s20, 5 }
  0x14   : > { %s1994_s22 = smov (%p40_p0, %s39_s22), 0  ;;  %s1996_s23 = smov (!%p40_p0, %s42_s23), %s1559_s0 }
  0x15   : > { %1971 = sst [smem:[#allocation14_spill]] %s1994_s22  ;;  %p1670_p3 = por %p280_p2, %p279_p1 }
  0x16   : > { %p285_p4 = scmp.ne.s32.totalorder %s1539_s14, %s1535_s13  ;;  %p44_p5 = scmp.ge.s32.totalorder %s1996_s23, 2 }
  0x17   : > { %p286_p6 = scmp.eq.s32.totalorder %s1278_s21, 5  ;;  %p1281_p7 = scmp.ge.s32.totalorder %s1563_s19, 1 }
  0x18   : > { %p377_p8 = scmp.lt.s32.totalorder %s1563_s19, 7  ;;  %s1998_s23 = smov (%p44_p5, %s1996_s23), 0 }
  0x19   : > { %1973 = sst [smem:[#allocation15_spill]] %s1998_s23  ;;  %p1680_p9 = por %p286_p6, %p285_p4 }
  0x1a   : > { %p378_p10 = pnand %p1281_p7, %p377_p8  ;;  %s266_s26 = ssub.s32 %s1559_s0, %s1998_s23 }
  0x1b   : > { %s1974_s25 = scalar_select %p1680_p9, 1, 0 }
  0x1c   : > { %s269_s27 = sadd.s32 1, %s1543_s15  ;;  %p267_p11 = scmp.eq.s32.totalorder %s266_s26, 0 }
  0x1d   : > { %1975 = sst [smem:[#allocation16_spill]] %s1974_s25  ;;  %381 = sbr.rel (%p378_p10) target bundleno = 2538 (0x9ea), region = 52 }
  0x1e   : > { %s1688_s28 = scalar_select %p267_p11, %s1543_s15, %s269_s27  }
  0x1f   : > { %s1956_s29 = sand.u32 (!%p378_p10), 1, %s1539_s14   ;;  %p449_p12 = scmp.lt.s32.totalorder (!%p378_p10), %s1551_s17, 1 }
  0x20   : > { %1976 = sst [smem:[#allocation17_spill]] %s1688_s28  ;;  %s1694_s30 = sshll.u32 (!%p378_p10), %s1956_s29, 3 }
  0x21   : > { %p453_p13 = scmp.lt.s32.totalorder (!%p378_p10), %s1547_s16, 2  ;;  %s456_s10 = sld [smem:[#allocation4 + %s1547_s16]] (!%p378_p10) }
  0x22   : > { %s450_s11 = scalar_select %p449_p12, %s1551_s17, 1 }
  0x23   : > { %s454_s12 = scalar_select %p453_p13, %s1547_s16, 2 }
  0x24   : > { %s1283_s20 = sshll.u32 %s450_s11, 3  ;;  %s463_s21 = sld [smem:[#allocation4 + %s1547_s16]] }
  0x25   : > { %s1977_s1 = sld [smem:[#allocation18_spill]]  ;;  %p1294_p7 = scmp.ne.s32.totalorder %s1547_s16, 0 }
  0x26   : > { %s1978_s2 = sld [smem:[#allocation19_spill]] }
  0x27   : > { %s470_s28 = sld [smem:[#allocation4 + %s1547_s16]]  ;;  %p457_p0 = scmp.lt.s32.totalorder %s456_s10, 2 }
  0x28   : > { %s477_s29 = sld [smem:[#allocation4 + %s1547_s16]] }
  0x29   : > { %s484_s15 = sld [smem:[#allocation4 + %s1547_s16]]  ;;  %s2000_s10 = smov (!%p457_p0, %s456_s10), 2 }
  0x2a   : > { %p464_p1 = scmp.lt.s32.totalorder %s463_s21, 2  ;;  %s491_s25 = sld [smem:[#allocation4 + %s1547_s16]] }
  0x2b   : > { %s1704_s23 = scalar_lea.vmem %s1977_s1, %s1283_s20  ;;  %s1356_s13 = smul.u32 24, %s2000_s10 }
  0x2c   : > { %s1709_s18 = scalar_lea.vmem %s1978_s2, %s454_s12  ;;  %s2002_s21 = smov (!%p464_p1, %s463_s21), 2 }
  0x2d   : > { %s1979_s3 = sld [smem:[#allocation20_spill]]  ;;  %p471_p2 = scmp.lt.s32.totalorder %s470_s28, 2 }
  0x2e   : > { %s1352_s20 = sshll.u32 %s2002_s21, 6  ;;  %p478_p4 = scmp.lt.s32.totalorder %s477_s29, 2 }
  0x2f   : > { %s1980_s4 = sld [smem:[#allocation21_spill]]  ;;  %p485_p5 = scmp.lt.s32.totalorder %s484_s15, 2 }
  0x30   : > { %s2004_s28 = smov (!%p471_p2, %s470_s28), 2  ;;  %s2006_s29 = smov (!%p478_p4, %s477_s29), 2 }
  0x31   : > { %s1357_s27 = smul.u32 192, %s2004_s28  ;;  %p492_p6 = scmp.lt.s32.totalorder %s491_s25, 2 }
  0x32   : > { %s1353_s10 = sshll.u32 %s2006_s29, 8  ;;  %s2008_s15 = smov (!%p485_p5, %s484_s15), 2 }
  0x33   : > { %s1718_s26 = scalar_lea.vmem %s1979_s3, %s1356_s13  ;;  %s1728_s13 = scalar_lea.vmem %s1948_s5, %s1357_s27 }
  0x34   : > { %s1733_s11 = scalar_lea.vmem %s1949_s6, %s1353_s10  ;;  %s2010_s25 = smov (!%p492_p6, %s491_s25), 2 }
  0x35   : > { %s1723_s12 = scalar_lea.vmem %s1980_s4, %s1352_s20  ;;  %s1354_s20 = sshll.u32 %s2008_s15, 5 }
  0x36   : > { %s1738_s3 = scalar_lea.vmem %s1950_s7, %s1354_s20  ;;  %s1355_s28 = sshll.u32 %s2010_s25, 6 }
  0x37   : > { %s1743_s1 = scalar_lea.vmem %s1951_s8, %s1355_s28  ;;  %s448_s2 = scalar_lea.vmem [#allocation5], %s1694_s30 }
  0x38   : > { %501 = sbr.rel (%p1294_p7) target bundleno = 63 (0x3f), region = 56 }
  0x3d   : > { %v502_v0 = vld [vmem:[%s1704_s23] sm:$0xff]  ;;  %vm503_vm0 = vcmask 261120  }
  0x3e   : > { %504 = vst.msk [vmem:[#allocation2] sm:$0xff] %vm503_vm0, %v502_v0 }
  0x3f PF: > { %v509_v1 = vld [vmem:[%s1709_s18] sm:$0x1]  ;;  %vm510_vm1 = vcmask 253952   ;;  %vm514_vm2 = vcmask 261120   ;;  %v1566_v5 = vmov 64.0   ;;  %v1298_v24 = vld [vmem:[%s1723_s12 + $0x38] sm:$0xff] }
  0x40   : > { %v511_v2 = vsel %vm510_vm1, %v509_v1, 0.0  ;;  %1433 = vrcp.f32 %v1566_v5  ;;  %v1432_v17 = vld [vmem:[%s1709_s18] ss:$0 sm:$0xff]  ;;  %v1297_v25 = vld [vmem:[%s1723_s12 + $0x30] sm:$0xff]  ;;  %588 = vmatpush.msra.mxu2 %v1298_v24  ;;  %v1296_v27 = vld [vmem:[%s1723_s12 + $0x28] sm:$0xff]  ;;  %vm764_vm11 = vcmask 64512  }
  0x41   : > { %512 = vadd.xlane.f32.xlu0 %v511_v2  ;;  %v1295_v28 = vld [vmem:[%s1723_s12 + $0x20] sm:$0xff]  ;;  %v567_v29 = vld [vmem:[%s1723_s12 + $0x18] sm:$0xff]  ;;  %v566_v30 = vld [vmem:[%s1723_s12 + $0x10] sm:$0xff]  ;;  %vm1079_vm15 = vcmask 523264   ;;  %p1347_p8 = scmp.ne.s32.totalorder %s1547_s16, 2 }
  0x42   : > { %589 = vmatpush.msra.mxu2 %v1297_v25  ;;  %v565_v33 = vld [vmem:[%s1723_s12 + $0x8] sm:$0xff]  ;;  %v564_v35 = vld [vmem:[%s1723_s12] sm:$0xff]  ;;  %v1309_v24 = vld [vmem:[%s1728_s13 + $0x90] sm:$0xff] }
  0x43   : > { %v1766_v42 = vld [vmem:[%s1718_s26] sm:$0xff]  ;;  %v665_v25 = vld [vmem:[%s1728_s13 + $0x8] sm:$0xff] }
  0x44   : > { %590 = vmatpush.msra.mxu2 %v1296_v27  ;;  %v560_v44 = vperm.slane %v1766_v42, 1  ;;  %v562_v47 = vperm.slane %v1766_v42, 3  ;;  %v555_v51 = vperm.slane %v1766_v42, 0  ;;  %v557_v53 = vperm.slane %v1766_v42, 2  ;;  %v1308_v27 = vld [vmem:[%s1728_s13 + $0x88] sm:$0xff] }
  0x45   : > { %v1749_v3 = vld [vmem:[#allocation2] sm:$0xff]  ;;  %v619_v56 = vperm.slane %v1766_v42, 4 }
  0x46   : > { %v515_v4 = vsel %vm514_vm2, %v1749_v3, 0.0  ;;  %v1434_v6 = vpop.eup %1433  ;;  %591 = vmatpush.msra.mxu2 %v1295_v28  ;;  %v664_v28 = vld [vmem:[%s1728_s13] sm:$0xff] }
  0x47   : > { %v521_v7 = vmul.f32 64.0, %v1434_v6  ;;  %vm525_vm3 = vweird.f32 %v1434_v6 }
  0x48   : > { %611 = vmatpush.msrb.mxu2 %v567_v29  ;;  %v1302_v29 = vld [vmem:[%s1728_s13 + $0x40] sm:$0xff] }
  0x49   : > { %516 = vadd.xlane.f32.xlu0 %v515_v4  ;;  %v522_v8 = vsub.f32 1.0, %v521_v7 }
  0x4a   : > { %612 = vmatpush.msrb.mxu2 %v566_v30  ;;  %v1307_v30 = vld [vmem:[%s1728_s13 + $0x80] sm:$0xff] }
  0x4b   : > { %v523_v10 = vmul.f32 %v1434_v6, %v522_v8  ;;  %v1567_v8 = vmov 32.0  }
  0x4c   : > { %613 = vmatpush.msrb.mxu2 %v565_v33  ;;  %v1315_v33 = vld [vmem:[%s1728_s13 + $0x30] sm:$0xff] }
  0x4d   : > { %v524_v11 = vadd.f32 %v1434_v6, %v523_v10 }
  0x4e   : > { %614 = vmatpush.msrb.mxu2 %v564_v35 }
  0x4f   : > { %v526_v13 = vsel %vm525_vm3, %v1434_v6, %v524_v11 }
  0xb4   : > { %v513_v9 = vpop.xlane.xlu0 %512 }
  0xb5   : > { %v518_v12 = vperm.slane %v513_v9, 0 }
  0xbc   : > { %v517_v14 = vpop.xlane.xlu0 %516 }
  0xbd   : > { %v519_v15 = vadd.f32 %v518_v12, %v517_v14 }
  0xbf   : > { %v527_v16 = vmul.f32 %v526_v13, %v519_v15 }
  0xc1   : > { %v528_v18 = vsub.f32 %v1749_v3, %v527_v16  ;;  %v532_v21 = vsub.f32 %v1432_v17, %v527_v16 }
  0xc3   : > { %v533_v19 = vmul.f32 %v528_v18, %v528_v18  ;;  %v537_v22 = vmul.f32 %v532_v21, %v532_v21 }
  0xc5   : > { %v534_v20 = vsel %vm514_vm2, %v533_v19, 0.0  ;;  %v538_v23 = vsel %vm514_vm2, %v537_v22, 0.0  ;;  %v667_v19 = vld [vmem:[%s1728_s13 + $0x18] sm:$0xff]  ;;  %v666_v22 = vld [vmem:[%s1728_s13 + $0x10] sm:$0xff] }
  0xc6   : > { %535 = vadd.xlane.f32.xlu1 %v534_v20  ;;  %v1305_v20 = vld [vmem:[%s1728_s13 + $0x58] sm:$0xff] }
  0xc7   : > { %710 = vmatpush.msra.mxu3 %v1305_v20  ;;  %v813_v20 = vld [vmem:[%s1733_s11 + $0x70] sm:$0xff] }
  0xce   : > { %539 = vadd.xlane.f32.xlu1 %v538_v23  ;;  %v1304_v23 = vld [vmem:[%s1728_s13 + $0x50] sm:$0xff] }
  0xcf   : > { %711 = vmatpush.msra.mxu3 %v1304_v23  ;;  %v810_v23 = vld [vmem:[%s1733_s11 + $0x58] sm:$0xff] }
 0x139   : > { %v536_v26 = vpop.xlane.xlu1 %535 }
 0x141   : > { %v540_v31 = vpop.xlane.xlu1 %539 }
 0x142   : > { %v541_v32 = vadd.f32 %v540_v31, %v536_v26  ;;  %v1303_v26 = vld [vmem:[%s1728_s13 + $0x48] sm:$0xff]  ;;  %v1316_v31 = vld [vmem:[%s1728_s13 + $0x38] sm:$0xff] }
 0x143   : > { %712 = vmatpush.msra.mxu3 %v1303_v26  ;;  %v807_v26 = vld [vmem:[%s1733_s11 + $0x40] sm:$0xff] }
 0x144   : > { %v542_v34 = vmul.f32 %v541_v32, %v526_v13  ;;  %v1321_v32 = vld [vmem:[%s1728_s13 + $0x78] sm:$0xff] }
 0x145   : > { %713 = vmatpush.msra.mxu3 %v1302_v29  ;;  %v805_v29 = vld [vmem:[%s1733_s11 + $0x30] sm:$0xff] }
 0x146   : > { %v543_v36 = vadd.f32 1e-05, %v542_v34  ;;  %v1320_v34 = vld [vmem:[%s1728_s13 + $0x70] sm:$0xff] }
 0x147   : > { %833 = vmatpush.msrb.mxu3 %v1316_v31  ;;  %v803_v31 = vld [vmem:[%s1733_s11 + $0x20] sm:$0xff] }
 0x148   : > { %1435 = vrsqrt.f32 %v543_v36  ;;  %vm550_vm5 = vweird.f32 %v543_v36 }
 0x149   : > { %834 = vmatpush.msrb.mxu3 %v1315_v33 }
 0x14e   : > { %v1436_v37 = vpop.eup %1435 }
 0x14f   : > { %v545_v38 = vmul.f32 %v1436_v37, %v543_v36  ;;  %vm551_vm4 = vweird.f32 %v1436_v37  ;;  %v1314_v36 = vld [vmem:[%s1728_s13 + $0x28] sm:$0xff] }
 0x150   : > { %vm552_vm6 = vmor %vm550_vm5, %vm551_vm4  ;;  %835 = vmatpush.msrb.mxu3 %v1314_v36 }
 0x151   : > { %v546_v39 = vmul.f32 %v1436_v37, %v545_v38 }
 0x153   : > { %v547_v40 = vmul.f32 0.5, %v546_v39  ;;  %v1313_v39 = vld [vmem:[%s1728_s13 + $0x20] sm:$0xff] }
 0x154   : > { %836 = vmatpush.msrb.mxu3 %v1313_v39 }
 0x155   : > { %v548_v41 = vsub.f32 1.5, %v547_v40  ;;  %v1318_v40 = vld [vmem:[%s1728_s13 + $0x60] sm:$0xff] }
 0x157   : > { %v549_v43 = vmul.f32 %v1436_v37, %v548_v41 }
 0x159   : > { %v553_v45 = vsel %vm552_vm6, %v1436_v37, %v549_v43  ;;  %v1319_v37 = vld [vmem:[%s1728_s13 + $0x68] sm:$0xff] }
 0x15a   : > { %v559_v46 = vmul.f32 %v553_v45, %v532_v21  ;;  %v554_v49 = vmul.f32 %v553_v45, %v528_v18  ;;  %v1310_v21 = vld [vmem:[%s1728_s13 + $0x98] sm:$0xff] }
 0x15b   : > { %736 = vmatpush.msra.mxu0 %v1310_v21  ;;  %v812_v21 = vld [vmem:[%s1733_s11 + $0x68] sm:$0xff] }
 0x15c   : > { %v561_v48 = vmul.f32 %v560_v44, %v559_v46  ;;  %v556_v52 = vmul.f32 %v555_v51, %v554_v49  ;;  %v660_v49 = vperm.slane %v1766_v42, 5  ;;  %v662_v51 = vperm.slane %v1766_v42, 6 }
 0x15d   : > { %737 = vmatpush.msra.mxu0 %v1309_v24  ;;  %v809_v24 = vld [vmem:[%s1733_s11 + $0x50] sm:$0xff] }
 0x15e   : > { %v563_v50 = vadd.f32 %v562_v47, %v561_v48  ;;  %v558_v54 = vadd.f32 %v557_v53, %v556_v52 }
 0x15f   : > { %738 = vmatpush.msra.mxu0 %v1308_v27 }
 0x160   : > { %1299 = vmatmul.msk.f32.vlgmr.msra.gmra.mxu2 %vm514_vm2, %v563_v50 }
 0x161   : > { %684 = vmatpush.msra.mxu2 %v667_v19  ;;  %739 = vmatpush.msra.mxu0 %v1307_v30  ;;  %v814_v19 = vld [vmem:[%s1733_s11 + $0x78] sm:$0xff]  ;;  %v804_v30 = vld [vmem:[%s1733_s11 + $0x28] sm:$0xff] }
 0x163   : > { %685 = vmatpush.msra.mxu2 %v666_v22  ;;  %859 = vmatpush.msrb.mxu0 %v1321_v32  ;;  %v811_v22 = vld [vmem:[%s1733_s11 + $0x60] sm:$0xff] }
 0x165   : > { %686 = vmatpush.msra.mxu2 %v665_v25  ;;  %860 = vmatpush.msrb.mxu0 %v1320_v34  ;;  %v808_v25 = vld [vmem:[%s1733_s11 + $0x48] sm:$0xff]  ;;  %v802_v34 = vld [vmem:[%s1733_s11 + $0x18] sm:$0xff] }
 0x167   : > { %687 = vmatpush.msra.mxu2 %v664_v28  ;;  %861 = vmatpush.msrb.mxu0 %v1319_v37  ;;  %v806_v28 = vld [vmem:[%s1733_s11 + $0x38] sm:$0xff]  ;;  %v800_v37 = vld [vmem:[%s1733_s11 + $0x8] sm:$0xff] }
 0x168   : > { %1300 = vmatmul.msk.f32.vlgmr.msrb.gmra.mxu2 %vm514_vm2, %v558_v54 }
 0x169   : > { %862 = vmatpush.msrb.mxu0 %v1318_v40  ;;  %v799_v40 = vld [vmem:[%s1733_s11] sm:$0xff] }
 0x1e3   : > { %v593_v55 = vpop.f32.mrf.mxu2 }
 0x1eb   : > { %v616_v57 = vpop.f32.mrf.mxu2 }
 0x1ec   : > { %v617_v58 = vadd.f32 %v616_v57, %v593_v55  ;;  %v1814_v55 = vld [vmem:[%s1718_s26 + $0x8] sm:$0xff] }
 0x1ed   : > { %v820_v36 = vperm.slane %v1814_v55, 0 }
 0x1ee   : > { %v620_v59 = vadd.f32 %v619_v56, %v617_v58  ;;  %v723_v56 = vperm.slane %v1814_v55, 3 }
 0x1f0   : > { %v622_v60 = vmul.f32 0.044715, %v620_v59  ;;  %v621_v2 = vmul.f32 0.5, %v620_v59 }
 0x1f2   : > { %v623_v61 = vmul.f32 %v622_v60, %v620_v59  ;;  %v668_v60 = vperm.slane %v1766_v42, 7 }
 0x1f4   : > { %v624_v62 = vmul.f32 %v623_v61, %v620_v59 }
 0x1f6   : > { %v625_v63 = vadd.f32 %v624_v62, %v620_v59  ;;  %v697_v59 = vperm.slane %v1814_v55, 1  ;;  %v846_v62 = vperm.slane %v1814_v55, 2 }
 0x1f8   : > { %v626_v0 = vmul.f32 0.7978846, %v625_v63 }
 0x1fa   : > { %1437 = vtanh.f32 %v626_v0 }
 0x1fb   : > { %1439 = vrcp.f32 %v1567_v8  ;;  %v1324_v8 = vld [vmem:[%s1728_s13 + $0xa8] sm:$0xff] }
 0x200   : > { %v1438_v1 = vpop.eup %1437 }
 0x201   : > { %v628_v4 = vadd.f32 1.0, %v1438_v1  ;;  %v1440_v9 = vpop.eup %1439  ;;  %v1326_v1 = vld [vmem:[%s1728_s13 + $0xb8] sm:$0xff] }
 0x202   : > { %v635_v10 = vmul.f32 32.0, %v1440_v9  ;;  %vm639_vm7 = vweird.f32 %v1440_v9 }
 0x203   : > { %v629_v5 = vmul.f32 %v628_v4, %v621_v2 }
 0x204   : > { %v636_v11 = vsub.f32 1.0, %v635_v10 }
 0x205   : > { %v1776_v6 = vadd.f32 %v629_v5, %v1749_v3 }
 0x206   : > { %v637_v12 = vmul.f32 %v1440_v9, %v636_v11  ;;  %v872_v11 = vperm.slane %v1814_v55, 4 }
 0x207   : > { %v631_v7 = vsel %vm514_vm2, %v1776_v6, 0.0 }
 0x208   : > { %632 = vadd.xlane.f32.xlu2 %v631_v7  ;;  %v638_v13 = vadd.f32 %v1440_v9, %v637_v12  ;;  %v1325_v7 = vld [vmem:[%s1728_s13 + $0xb0] sm:$0xff] }
 0x20a   : > { %v1780_v3 = vsel %vm639_vm7, %v1440_v9, %v638_v13  ;;  %v1323_v9 = vld [vmem:[%s1728_s13 + $0xa0] sm:$0xff] }
 0x27b   : > { %v633_v14 = vpop.xlane.xlu2 %632 }
 0x27c   : > { %v641_v15 = vmul.f32 %v1780_v3, %v633_v14 }
 0x27e   : > { %v642_v16 = vsub.f32 %v1776_v6, %v641_v15 }
 0x280   : > { %v643_v17 = vmul.f32 %v642_v16, %v642_v16 }
 0x282   : > { %v644_v18 = vsel %vm514_vm2, %v643_v17, 0.0 }
 0x283   : > { %645 = vadd.xlane.f32.xlu2 %v644_v18 }
 0x2f6   : > { %v646_v35 = vpop.xlane.xlu2 %645 }
 0x2f7   : > { %v647_v38 = vmul.f32 %v646_v35, %v1780_v3  ;;  %v801_v35 = vld [vmem:[%s1733_s11 + $0x10] sm:$0xff] }
 0x2f9   : > { %v648_v41 = vadd.f32 1e-12, %v647_v38 }
 0x2fb   : > { %1441 = vrsqrt.f32 %v648_v41  ;;  %vm655_vm9 = vweird.f32 %v648_v41 }
 0x301   : > { %v1442_v43 = vpop.eup %1441 }
 0x302   : > { %v650_v44 = vmul.f32 %v1442_v43, %v648_v41  ;;  %vm656_vm8 = vweird.f32 %v1442_v43 }
 0x303   : > { %vm657_vm10 = vmor %vm655_vm9, %vm656_vm8 }
 0x304   : > { %v651_v45 = vmul.f32 %v1442_v43, %v650_v44 }
 0x306   : > { %v652_v46 = vmul.f32 0.5, %v651_v45 }
 0x308   : > { %v653_v47 = vsub.f32 1.5, %v652_v46 }
 0x30a   : > { %v654_v48 = vmul.f32 %v1442_v43, %v653_v47 }
 0x30c   : > { %v658_v50 = vsel %vm657_vm10, %v1442_v43, %v654_v48 }
 0x30d   : > { %v659_v52 = vmul.f32 %v658_v50, %v642_v16  ;;  %v1344_v50 = vld [vmem:[%s1733_s11 + $0xf8] sm:$0xff] }
 0x30f   : > { %v661_v53 = vmul.f32 %v660_v49, %v659_v52  ;;  %v1342_v52 = vld [vmem:[%s1733_s11 + $0xe8] sm:$0xff] }
 0x311   : > { %v663_v54 = vadd.f32 %v662_v51, %v661_v53  ;;  %v1343_v51 = vld [vmem:[%s1733_s11 + $0xf0] sm:$0xff]  ;;  %v1341_v53 = vld [vmem:[%s1733_s11 + $0xe0] sm:$0xff] }
 0x313   : > { %1301 = vmatmul.msk.f32.vlgmr.msra.gmra.mxu2 %vm514_vm2, %v663_v54  ;;  %1306 = vmatmul.msk.f32.vlgmr.msra.gmra.mxu3 %vm514_vm2, %v663_v54 }
 0x314   : > { %1311 = vmatmul.msk.f32.vlgmr.msra.gmra.mxu0 %vm514_vm2, %v663_v54 }
 0x315   : > { %964 = vmatpush.msra.mxu0 %v1344_v50 }
 0x317   : > { %965 = vmatpush.msra.mxu0 %v1343_v51 }
 0x319   : > { %966 = vmatpush.msra.mxu0 %v1342_v52 }
 0x31b   : > { %1317 = vmatmul.msk.f32.vlgmr.msrb.gmra.mxu3 %vm514_vm2, %v663_v54  ;;  %967 = vmatpush.msra.mxu0 %v1341_v53 }
 0x31c   : > { %1322 = vmatmul.msk.f32.vlgmr.msrb.gmra.mxu0 %vm514_vm2, %v663_v54 }
 0x391   : > { %v741_v57 = vpop.f32.mrf.mxu0 }
 0x392   : > { %v742_v58 = vadd.f32 %v741_v57, %v723_v56  ;;  %v1339_v56 = vld [vmem:[%s1733_s11 + $0xd0] sm:$0xff]  ;;  %v1338_v57 = vld [vmem:[%s1733_s11 + $0xc8] sm:$0xff] }
 0x394   : > { %794 = vmatpush.msrb.mxu2 %v742_v58  ;;  %v1337_v58 = vld [vmem:[%s1733_s11 + $0xc0] sm:$0xff] }
 0x396   : > { %v715_v61 = vpop.f32.mrf.mxu3  ;;  %v689_v63 = vpop.f32.mrf.mxu2 }
 0x397   : > { %v716_v0 = vadd.f32 %v715_v61, %v697_v59  ;;  %v690_v4 = vadd.f32 %v689_v63, %v668_v60  ;;  %v1336_v59 = vld [vmem:[%s1733_s11 + $0xb8] sm:$0xff]  ;;  %v1335_v60 = vld [vmem:[%s1733_s11 + $0xb0] sm:$0xff]  ;;  %v1334_v61 = vld [vmem:[%s1733_s11 + $0xa8] sm:$0xff] }
 0x399   : > { %v864_v2 = vpop.f32.mrf.mxu0  ;;  %759 = vmatpush.xpose.msra.mxu1 %v716_v0  ;;  %v1332_v0 = vld [vmem:[%s1733_s11 + $0x98] sm:$0xff] }
 0x39a   : > { %v865_v5 = vadd.f32 %v864_v2, %v846_v62  ;;  %v1333_v62 = vld [vmem:[%s1733_s11 + $0xa0] sm:$0xff]  ;;  %v1330_v2 = vld [vmem:[%s1733_s11 + $0x88] sm:$0xff] }
 0x39c   : > { %908 = vmatpush.xpose.msra.mxu2 %v865_v5  ;;  %760 = vmatmul.f32.vlgmr.msra.gmra.mxu1 %v690_v4 }
 0x39d   : > { %885 = vmatpush.msrb.mxu1 %v1326_v1  ;;  %v1331_v1 = vld [vmem:[%s1733_s11 + $0x90] sm:$0xff] }
 0x39e   : > { %v838_v38 = vpop.f32.mrf.mxu3 }
 0x39f   : > { %886 = vmatpush.msrb.mxu1 %v1325_v7  ;;  %v839_v39 = vadd.f32 %v838_v38, %v820_v36  ;;  %v1329_v7 = vld [vmem:[%s1733_s11 + $0x80] sm:$0xff]  ;;  %v1076_v38 = vld [vmem:[%s1743_s1 + $0x30] sm:$0xff] }
 0x3a1   : > { %887 = vmatpush.msrb.mxu1 %v1324_v8 }
 0x3a3   : > { %888 = vmatpush.msrb.mxu1 %v1323_v9  ;;  %v1004_v9 = vperm.slane %v1814_v55, 5 }
 0x3a4   : > { %1327 = vmatmul.msk.f32.vlgmr.msrb.gmra.mxu1 %vm514_vm2, %v663_v54  ;;  %v1340_v54 = vld [vmem:[%s1733_s11 + $0xd8] sm:$0xff] }
 0x3a5   : > { %984 = vmatpush.msra.mxu1 %v814_v19  ;;  %968 = vmatpush.msra.mxu0 %v1340_v54 }
 0x3a7   : > { %985 = vmatpush.msra.mxu1 %v813_v20  ;;  %969 = vmatpush.msra.mxu0 %v1339_v56  ;;  %v1036_v20 = vld [vmem:[%s1738_s3 + $0x18] sm:$0xff] }
 0x3a9   : > { %986 = vmatpush.msra.mxu1 %v812_v21  ;;  %970 = vmatpush.msra.mxu0 %v1338_v57  ;;  %v1035_v21 = vld [vmem:[%s1738_s3 + $0x10] sm:$0xff] }
 0x3ab   : > { %987 = vmatpush.msra.mxu1 %v811_v22  ;;  %971 = vmatpush.msra.mxu0 %v1337_v58  ;;  %v1034_v22 = vld [vmem:[%s1738_s3 + $0x8] sm:$0xff] }
 0x3ad   : > { %988 = vmatpush.msra.mxu1 %v810_v23  ;;  %972 = vmatpush.msra.mxu0 %v1336_v59 }
 0x3af   : > { %989 = vmatpush.msra.mxu1 %v809_v24  ;;  %973 = vmatpush.msra.mxu0 %v1335_v60 }
 0x3b1   : > { %990 = vmatpush.msra.mxu1 %v808_v25  ;;  %974 = vmatpush.msra.mxu0 %v1334_v61 }
 0x3b3   : > { %991 = vmatpush.msra.mxu1 %v807_v26  ;;  %975 = vmatpush.msra.mxu0 %v1333_v62 }
 0x3b5   : > { %992 = vmatpush.msra.mxu1 %v806_v28  ;;  %976 = vmatpush.msra.mxu0 %v1332_v0 }
 0x3b7   : > { %993 = vmatpush.msra.mxu1 %v805_v29  ;;  %977 = vmatpush.msra.mxu0 %v1331_v1 }
 0x3b9   : > { %994 = vmatpush.msra.mxu1 %v804_v30  ;;  %978 = vmatpush.msra.mxu0 %v1330_v2 }
 0x3bb   : > { %995 = vmatpush.msra.mxu1 %v803_v31  ;;  %979 = vmatpush.msra.mxu0 %v1329_v7 }
 0x3bd   : > { %996 = vmatpush.msra.mxu1 %v802_v34  ;;  %v1031_v34 = vperm.slane %v1814_v55, 7 }
 0x3bf   : > { %997 = vmatpush.msra.mxu1 %v801_v35 }
 0x3c1   : > { %998 = vmatpush.msra.mxu1 %v800_v37  ;;  %v1077_v37 = vld [vmem:[%s1743_s1 + $0x38] sm:$0xff] }
 0x3c3   : > { %999 = vmatpush.msra.mxu1 %v799_v40  ;;  %v1074_v40 = vld [vmem:[%s1743_s1 + $0x20] sm:$0xff] }
 0x419   : > { %v761_v42 = vpop.f32.mrf.mxu1 }
 0x41a   : > { %v765_v10 = vsel %vm764_vm11, %v761_v42, -inf }
 0x41b   : > { %766 = vmax.xlane.f32.xlu0 %v765_v10 }
 0x421   : > { %v890_v12 = vpop.f32.mrf.mxu1 }
 0x422   : > { %v891_v13 = vadd.f32 %v890_v12, %v872_v11 }
 0x424   : > { %942 = vmatpush.msra.mxu3 %v891_v13 }
 0x426   : > { %1091 = vmatpush.msrb.mxu3 %v1077_v37 }
 0x428   : > { %1092 = vmatpush.msrb.mxu3 %v1076_v38 }
 0x48e   : > { %v767_v14 = vpop.xlane.xlu0 %766 }
 0x48f   : > { %v768_v15 = vsub.f32 %v761_v42, %v767_v14 }
 0x491   : > { %v769_v16 = vmul.f32 1.442695, %v768_v15 }
 0x493   : > { %1443 = vpow2.f32 %v769_v16 }
 0x499   : > { %v1444_v17 = vpop.eup %1443 }
 0x49a   : > { %v771_v18 = vsel %vm764_vm11, %v1444_v17, 0.0 }
 0x49b   : > { %772 = vadd.xlane.f32.xlu1 %v771_v18 }
 0x50e   : > { %v773_v27 = vpop.xlane.xlu1 %772 }
 0x50f   : > { %1445 = vrcp.f32 %v773_v27 }
 0x515   : > { %v1446_v32 = vpop.eup %1445 }
 0x516   : > { %v775_v33 = vmul.f32 %v1446_v32, %v1444_v17  ;;  %v1029_v32 = vperm.slane %v1814_v55, 6  ;;  %v1070_v55 = vld [vmem:[%s1743_s1] sm:$0xff] }
 0x518   : > { %1312 = vmatmul.msk.f32.vlgmr.msrb.gmra.mxu2 %vm764_vm11, %v775_v33 }
 0x519   : > { %1053 = vmatpush.msrb.mxu2 %v1036_v20 }
 0x51b   : > { %1054 = vmatpush.msrb.mxu2 %v1035_v21 }
 0x51d   : > { %1055 = vmatpush.msrb.mxu2 %v1034_v22 }
 0x520   : > { %909 = vmatmul.f32.vlgmr.msra.gmra.mxu2 %v839_v39  ;;  %v1075_v39 = vld [vmem:[%s1743_s1 + $0x28] sm:$0xff] }
 0x521   : > { %1093 = vmatpush.msrb.mxu3 %v1075_v39 }
 0x523   : > { %1094 = vmatpush.msrb.mxu3 %v1074_v40 }
 0x59b   : > { %v796_v41 = vpop.f32.mrf.mxu2 }
 0x59c   : > { %1000 = vmatmul.f32.vlgmr.msra.gmra.mxu1 %v796_v41  ;;  %v1073_v41 = vld [vmem:[%s1743_s1 + $0x18] sm:$0xff] }
 0x59d   : > { %1095 = vmatpush.msrb.mxu3 %v1073_v41 }
 0x5a3   : > { %v910_v43 = vpop.f32.mrf.mxu2 }
 0x5a4   : > { %v913_v44 = vsel %vm764_vm11, %v910_v43, -inf }
 0x5a5   : > { %914 = vmax.xlane.f32.xlu2 %v913_v44  ;;  %v1071_v44 = vld [vmem:[%s1743_s1 + $0x8] sm:$0xff] }
 0x618   : > { %v915_v45 = vpop.xlane.xlu2 %914 }
 0x619   : > { %v916_v46 = vsub.f32 %v910_v43, %v915_v45  ;;  %v1001_v42 = vpop.f32.mrf.mxu1  ;;  %v1072_v43 = vld [vmem:[%s1743_s1 + $0x10] sm:$0xff] }
 0x61a   : > { %1096 = vmatpush.msrb.mxu3 %v1072_v43  ;;  %v508_v45 = vld [vmem:[%s1718_s26 + $0x10] sm:$0xff] }
 0x61b   : > { %v917_v47 = vmul.f32 1.442695, %v916_v46  ;;  %v1037_v46 = vperm.slane %v508_v45, 0  ;;  %v1078_v59 = vperm.slane %v508_v45, 1 }
 0x61c   : > { %1097 = vmatpush.msrb.mxu3 %v1071_v44 }
 0x61d   : > { %1447 = vpow2.f32 %v917_v47 }
 0x61e   : > { %1098 = vmatpush.msrb.mxu3 %v1070_v55 }
 0x623   : > { %v1448_v48 = vpop.eup %1447 }
 0x624   : > { %v919_v49 = vsel %vm764_vm11, %v1448_v48, 0.0 }
 0x625   : > { %920 = vadd.xlane.f32.xlu0 %v919_v49 }
 0x698   : > { %v921_v63 = vpop.xlane.xlu0 %920 }
 0x699   : > { %1449 = vrcp.f32 %v921_v63 }
 0x69f   : > { %v1450_v4 = vpop.eup %1449 }
 0x6a0   : > { %v923_v5 = vmul.f32 %v1450_v4, %v1448_v48 }
 0x6a2   : > { %1328 = vmatmul.msk.f32.vlgmr.msra.gmra.mxu3 %vm764_vm11, %v923_v5 }
 0x725   : > { %v944_v8 = vpop.f32.mrf.mxu3 }
 0x726   : > { %980 = vmatmul.f32.vlgmr.msra.gmra.mxu0 %v944_v8 }
 0x7a3   : > { %v981_v10 = vpop.f32.mrf.mxu0 }
 0x7a4   : > { %v1002_v11 = vadd.f32 %v1001_v42, %v981_v10 }
 0x7a6   : > { %v1005_v12 = vadd.f32 %v1004_v9, %v1002_v11 }
 0x7a8   : > { %v1867_v13 = vadd.f32 %v1005_v12, %v1776_v6  ;;  %v1033_v6 = vld [vmem:[%s1738_s3] sm:$0xff] }
 0x7a9   : > { %1056 = vmatpush.msrb.mxu2 %v1033_v6 }
 0x7aa   : > { %v1007_v14 = vsel %vm514_vm2, %v1867_v13, 0.0 }
 0x7ab   : > { %1008 = vadd.xlane.f32.xlu1 %v1007_v14 }
 0x81e   : > { %v1009_v15 = vpop.xlane.xlu1 %1008 }
 0x81f   : > { %v1010_v16 = vmul.f32 %v1009_v15, %v1780_v3 }
 0x821   : > { %v1011_v17 = vsub.f32 %v1867_v13, %v1010_v16 }
 0x823   : > { %v1012_v18 = vmul.f32 %v1011_v17, %v1011_v17 }
 0x825   : > { %v1013_v19 = vsel %vm514_vm2, %v1012_v18, 0.0 }
 0x826   : > { %1014 = vadd.xlane.f32.xlu2 %v1013_v19 }
 0x899   : > { %v1015_v23 = vpop.xlane.xlu2 %1014 }
 0x89a   : > { %v1016_v24 = vmul.f32 %v1015_v23, %v1780_v3 }
 0x89c   : > { %v1017_v25 = vadd.f32 1e-12, %v1016_v24 }
 0x89e   : > { %1451 = vrsqrt.f32 %v1017_v25  ;;  %vm1024_vm13 = vweird.f32 %v1017_v25 }
 0x8a4   : > { %v1452_v26 = vpop.eup %1451 }
 0x8a5   : > { %v1019_v27 = vmul.f32 %v1452_v26, %v1017_v25  ;;  %vm1025_vm12 = vweird.f32 %v1452_v26 }
 0x8a6   : > { %vm1026_vm14 = vmor %vm1024_vm13, %vm1025_vm12 }
 0x8a7   : > { %v1020_v28 = vmul.f32 %v1452_v26, %v1019_v27 }
 0x8a9   : > { %v1021_v29 = vmul.f32 0.5, %v1020_v28 }
 0x8ab   : > { %v1022_v30 = vsub.f32 1.5, %v1021_v29 }
 0x8ad   : > { %v1023_v31 = vmul.f32 %v1452_v26, %v1022_v30 }
 0x8af   : > { %v1027_v3 = vsel %vm1026_vm14, %v1452_v26, %v1023_v31 }
 0x8b0   : > { %v1028_v33 = vmul.f32 %v1027_v3, %v1011_v17 }
 0x8b2   : > { %v1030_v35 = vmul.f32 %v1029_v32, %v1028_v33 }
 0x8b4   : > { %v1032_v36 = vadd.f32 %v1031_v34, %v1030_v35 }
 0x8b6   : > { %1345 = vmatmul.msk.f32.vlgmr.msrb.gmra.mxu2 %vm514_vm2, %v1032_v36 }
 0x939   : > { %v1058_v47 = vpop.f32.mrf.mxu2 }
 0x93a   : > { %v1059_v48 = vadd.f32 %v1058_v47, %v1037_v46 }
 0x93c   : > { %v1062_v49 = vmul.f32 0.044715, %v1059_v48  ;;  %v1061_v56 = vmul.f32 0.5, %v1059_v48 }
 0x93e   : > { %v1063_v50 = vmul.f32 %v1062_v49, %v1059_v48 }
 0x940   : > { %v1064_v51 = vmul.f32 %v1063_v50, %v1059_v48 }
 0x942   : > { %v1065_v52 = vadd.f32 %v1064_v51, %v1059_v48 }
 0x944   : > { %v1066_v53 = vmul.f32 0.7978846, %v1065_v52 }
 0x946   : > { %1453 = vtanh.f32 %v1066_v53 }
 0x94c   : > { %v1454_v54 = vpop.eup %1453 }
 0x94d   : > { %v1068_v57 = vadd.f32 1.0, %v1454_v54 }
 0x94f   : > { %v1069_v58 = vmul.f32 %v1068_v57, %v1061_v56 }
 0x951   : > { %1346 = vmatmul.msk.f32.vlgmr.msrb.gmra.mxu3 %vm1079_vm15, %v1069_v58 }
 0x9d4   : > { %v1100_v60 = vpop.f32.mrf.mxu3 }
 0x9d5   : > { %v1101_v61 = vadd.f32 %v1100_v60, %v1078_v59  ;;  %1108 = sbr.rel (%p1347_p8) target bundleno = 2523 (0x9db), region = 60 }
 0x9d7   : > { %v1103_v62 = vadd.f32 %v1101_v61, %v1867_v13 }
 0x9d9   : > { %1104 = vst.msk [vmem:[#allocation2] sm:$0xff] %vm514_vm2, %v1103_v62 }
 0x9da   : > { %1109 = vst.msk [vmem:[%s448_s2] sm:$0xff] %vm514_vm2, %v1103_v62 }
 0x9db PF: > { %s1349_s3 = sshll.u32 %s1551_s17, 3  ;;  %s1123_s23 = sshll.u32 %s448_s2, 4  ;;  %s1124_s23 = int_to_ptr.vmem [resolvable:$true] %s1123_s23 }
 0x9dc   : > { %s1121_s18 = scalar_lea.hbm %s1952_s9, %s1349_s3  ;;  %s1981_s16 = sand.u32 1, %s1539_s14  }
 0x9dd   : > { %s1125_s25 = sshll.u32 %s1121_s18, 4  ;;  %s1111_s26 = scalar_lea.sflag [#allocation6], %s1981_s16  ;;  %s1126_s25 = int_to_ptr.hbm [resolvable:$true] %s1125_s25 }
 0x9de   : > { %s1481_s12 = sshra.s32 %s1126_s25, 4  ;;  %s1487_s13 = scalar_lea.hbm %s1952_s9, 16  ;;  %s1482_s12 = int_to_ptr.hbm [resolvable:$true] %s1481_s12 }
 0x9df   : > { %s1483_s27 = scalar_lea.hbm %s1482_s12, 8  ;;  %p1488_p13 = scmp.lt.s32.totalorder %s1482_s12, %s1952_s9 }
 0x9e0   : > { %p1484_p10 = scmp.ne.s32.totalorder %s1482_s12, %s1483_s27  ;;  %p1489_p0 = scmp.lt.s32.totalorder %s1487_s13, %s1483_s27 }
 0x9e2   : > { %p1485_p11 = pnand %p1484_p10, %p1670_p3  ;;  %p1490_p1 = por %p1489_p0, %p1488_p13 }
 0x9e4   : > { %p1486_p12 = pneg %p1485_p11 }
 0x9e6   : > { %p1491_p2 = pnand %p1490_p1, %p1486_p12 }
 0x9e8   : > { %1494 = shalt.err (!%p1491_p2)
}
 0x9e9   : > { %1358 = dma.vmem_to_hbm [thread:$0]  (%p1670_p3), %s1124_s23, 128, %s1126_s25, %s1111_s26  }
 0x9ea PF: > { %s1982_s30 = sld [smem:[#allocation13_spill]] }
 0x9eb   : > { %s1983_s11 = sld [smem:[#allocation9_spill]] }
 0x9f0   : > { %p1364_p4 = scmp.ge.s32.totalorder %s1982_s30, 2 }
 0x9f1   : > { %s1137_s0 = sand.u32 1, %s1983_s11  }
 0x9f2   : > { %p1361_p5 = pnand %p1364_p4, %p1680_p9  ;;  %s1138_s22 = scalar_lea.sflag [#allocation6], %s1137_s0 }
 0x9f4   : > { %p1362_p6 = pneg %p1361_p5 }
 0x9f6   : > { %1530 = dma.done.wait (%p1362_p6), %s1138_s22, 128  }
 0x9f7   : > { %1532 = vsyncadd (%p1362_p6), %s1138_s22, 4294967168  ;;  %s30_s19 = sadd.s32 1, %s1982_s30   ;;  %s1985_s28 = sld [smem:[#allocation10_spill]] }
 0x9f8   : > { %p27_p7 = scmp.ge.s32.totalorder %s30_s19, 8   ;;  %s1986_s15 = sld [smem:[#allocation17_spill]] }
 0x9f9   : > { %s1987_s16 = sld [smem:[#allocation11_spill]]  ;;  %s1991_s13 = smov %s1539_s14 }
 0x9fa   : > { %s1988_s17 = sld [smem:[#allocation12_spill]]  ;;  %29 = sbr.rel (!%p27_p7) target bundleno = 14 (0xe), region = 123 }
 0x9fb   : > { %s1989_s18 = sld [smem:[#allocation14_spill]] }
 0x9fc   : > { %s1990_s0 = sld [smem:[#allocation15_spill]] }
 0x9fd   : > { %s1992_s14 = smov %s1985_s28 }
 0x9ff   :  { %1144 = vsyncpa [#allocation6], 1 }
 0xa00   :  { %1146 = vsyncpa [#allocation6 + $0x1], 1 }

</bundles_post_ra>
